<compile_context>
chip_gen: v7x
topology: tpu7x:2x2x1
jax: 0.10.0
libtpu: 0.0.40
codegen_flags: <defaults>
</compile_context>

<pallas_src>
import functools

import jax
import jax.numpy as jnp
import numpy as np
from jax.experimental import pallas as pl
from jax.experimental.pallas import tpu as pltpu


def _up_conv_kernel(x2_ref, x1_ref, w1_ref, b1_ref, w2_ref, b2_ref, mask_ref,
                    out_ref, padc_ref, col1_ref, padh_ref, col2_ref, *, W, PAD):
  """convBlock (conv3x3+BN+ReLU twice) for B lane-stacked images.

  x2_ref  : (1, C2, BHW)       skip-connection activations (flat NCHW, lane = B*H*W)
  x1_ref  : (1, C1, BHW)       upsampled/padded activations
  w1_ref  : (Cmid, 9*(C2+C1))  conv1 weights, BN1 scale folded, K = tap*(C2+C1)+c
  b1_ref  : (Cmid, 1)          folded BN1 shift (includes conv1 bias)
  w2_ref  : (Cout, 9*Cmid)     conv2 weights, BN2 scale folded
  b2_ref  : (Cout, 1)          folded BN2 shift
  mask_ref: (9, BHW)           per-tap validity mask (1 = tap in-bounds)
  out_ref : (1, Cout, BHW)
  padc/padh: VMEM (C, BHW+2*PAD) lane-halo scratch for the shifted tap reads
  col1/col2: VMEM (9*C, BHW)    im2col scratch (one matmul operand per conv)
  """
  BHW = x2_ref.shape[2]
  C2 = x2_ref.shape[1]
  C1 = x1_ref.shape[1]
  CC = C2 + C1
  Cmid = w1_ref.shape[0]
  Cout = w2_ref.shape[0]

  # Stage the (implicitly concatenated) conv1 input into one lane-padded
  # scratch: [0:PAD) zero halo | activations | zero halo.  Halos are re-zeroed
  # every step (batch axis is "parallel", scratch persists across steps) so the
  # masked OOB taps never multiply stale VMEM.
  padc_ref[:, :PAD] = jnp.zeros((CC, PAD), jnp.float32)
  padc_ref[:, PAD + BHW:] = jnp.zeros((CC, PAD), jnp.float32)
  padc_ref[:C2, PAD:PAD + BHW] = x2_ref[0]
  padc_ref[C2:, PAD:PAD + BHW] = x1_ref[0]

  padh_ref[:, :PAD] = jnp.zeros((Cmid, PAD), jnp.float32)
  padh_ref[:, PAD + BHW:] = jnp.zeros((Cmid, PAD), jnp.float32)

  # ---- conv1 (3x3, pad=1) + BN1 + ReLU : one fused-K matmul ----
  # im2col in VMEM: rows [tap*CC, (tap+1)*CC) of col1 are the lane-shifted,
  # OOB-masked windows of all input channels for tap (dy, dx).
  for dy in range(3):
    for dx in range(3):
      tap = 3 * dy + dx
      off = PAD + (dy - 1) * W + (dx - 1)
      col1_ref[tap * CC:(tap + 1) * CC, :] = (
          mask_ref[tap:tap + 1, :] * padc_ref[:, off:off + BHW])
  h = jnp.dot(w1_ref[...], col1_ref[...], preferred_element_type=jnp.float32)
  h = jnp.maximum(h + b1_ref[...], 0.0)                      # (Cmid, BHW)

  # ---- conv2 (3x3, pad=1) + BN2 + ReLU : one fused-K matmul ----
  # h stays on-chip: one aligned store into its padded scratch, no HBM trip.
  padh_ref[:, PAD:PAD + BHW] = h
  for dy in range(3):
    for dx in range(3):
      tap = 3 * dy + dx
      off = PAD + (dy - 1) * W + (dx - 1)
      col2_ref[tap * Cmid:(tap + 1) * Cmid, :] = (
          mask_ref[tap:tap + 1, :] * padh_ref[:, off:off + BHW])
  o = jnp.dot(w2_ref[...], col2_ref[...], preferred_element_type=jnp.float32)
  out_ref[0] = jnp.maximum(o + b2_ref[...], 0.0)


def _conv_tap_masks(H, W):
  """(9, H*W) validity masks for a 3x3 conv with zero padding, tap = 3*dy+dx."""
  hh = np.arange(H)[:, None]
  ww = np.arange(W)[None, :]
  rows = []
  for dy in range(3):
    for dx in range(3):
      oy, ox = dy - 1, dx - 1
      valid = ((hh + oy >= 0) & (hh + oy < H) &
               (ww + ox >= 0) & (ww + ox < W))
      rows.append(valid.reshape(H * W))
  return jnp.asarray(np.stack(rows).astype(np.float32))


def _interp_matrix_np(out_size, in_size):
  """(out_size, in_size) 1-D bilinear interpolation matrix, align_corners=True."""
  M = np.zeros((out_size, in_size), np.float32)
  if in_size == 1:
    M[:, 0] = 1.0
    return M
  s = np.arange(out_size, dtype=np.float64) * (in_size - 1) / (out_size - 1)
  i0 = np.clip(np.floor(s).astype(np.int64), 0, in_size - 2)
  i1 = i0 + 1
  f = (s - i0).astype(np.float32)
  M[np.arange(out_size), i0] += 1.0 - f
  M[np.arange(out_size), i1] += f
  return M


def bilinear_upsample_x2_matmul(x):
  """nn.Upsample(scale_factor=2, mode='bilinear', align_corners=True), NCHW.

  Gather-free: separable interpolation expressed as two small matmuls, which
  lower to MXU dot_general instead of TPU-unfriendly gathers.
  """
  N, C, H, W = x.shape
  Mh = jnp.asarray(_interp_matrix_np(2 * H, H))
  Mw = jnp.asarray(_interp_matrix_np(2 * W, W))
  t = jnp.einsum('nchw,Ww->nchW', x, Mw)
  return jnp.einsum('nchW,Hh->ncHW', t, Mh)


def bilinear_upsample_x2_gather(x):
  """Reference-only gather-based upsample (same math as PyTorch)."""
  N, C, H, W = x.shape
  Ho, Wo = 2 * H, 2 * W

  def src(out_size, in_size):
    if in_size == 1 or out_size == 1:
      s = jnp.zeros((out_size,), jnp.float32)
    else:
      s = jnp.arange(out_size, dtype=jnp.float32) * (in_size - 1) / (out_size - 1)
    i0 = jnp.clip(jnp.floor(s).astype(jnp.int32), 0, max(in_size - 2, 0))
    i1 = jnp.clip(i0 + 1, 0, in_size - 1)
    f = s - i0.astype(jnp.float32)
    return i0, i1, f

  h0, h1, fh = src(Ho, H)
  w0, w1, fw = src(Wo, W)
  xa = x[:, :, h0, :]
  xb = x[:, :, h1, :]
  top = xa[:, :, :, w0] * (1.0 - fw) + xa[:, :, :, w1] * fw
  bot = xb[:, :, :, w0] * (1.0 - fw) + xb[:, :, :, w1] * fw
  fh = fh[:, None]
  return top * (1.0 - fh) + bot * fh


def _pick_lane_batch(N, HW, max_lanes=8192):
  """Largest divisor B of N with B*HW <= max_lanes and >= 2 grid steps left."""
  best = 1
  for b in range(1, N + 1):
    if N % b == 0 and b * HW <= max_lanes and (N // b) >= 2:
      best = b
  return best


def up_forward(x1, x2, params):
  """Up.forward: upsample x1, pad, (implicit) concat with x2, convBlock."""
  w1k, b1, w2k, b2 = params

  # 1) bilinear x2 upsample, align_corners=True (gather-free matmul form).
  x1u = bilinear_upsample_x2_matmul(x1)

  # 2) F.pad — reproduces the module's exact (H/W-swapped) padding arithmetic.
  diffx = x2.shape[2] - x1u.shape[2]
  diffy = x2.shape[3] - x1u.shape[3]
  x1p = jnp.pad(x1u, ((0, 0), (0, 0),
                      (diffy // 2, diffy - diffy // 2),
                      (diffx // 2, diffx - diffx // 2)))

  N, C2, H, W = x2.shape
  C1 = x1p.shape[1]
  assert x1p.shape[2:] == (H, W)
  HW = H * W
  PAD = 128                       # lane halo; interior stores stay 128-aligned
  assert W + 1 <= PAD

  CC = C2 + C1
  Cmid = w1k.shape[0]
  Cout = w2k.shape[0]
  assert w1k.shape == (Cmid, 9 * CC) and w2k.shape == (Cout, 9 * Cmid)

  # 3) lane-stack B images per grid step; channel concat + conv halo padding
  #    happen inside the kernel (no transpose / pad / concat HBM round trips
  #    for the conv inputs).
  B = _pick_lane_batch(N, HW)
  G = N // B
  BHW = B * HW
  x2f = x2.reshape(G, B, C2, HW).transpose(0, 2, 1, 3).reshape(G, C2, BHW)
  x1f = x1p.reshape(G, B, C1, HW).transpose(0, 2, 1, 3).reshape(G, C1, BHW)
  masks = jnp.tile(_conv_tap_masks(H, W), (1, B))            # (9, BHW)

  kernel = functools.partial(_up_conv_kernel, W=W, PAD=PAD)

  out_flat = pl.pallas_call(
      kernel,
      out_shape=jax.ShapeDtypeStruct((G, Cout, BHW), jnp.float32),
      grid_spec=pltpu.PrefetchScalarGridSpec(
          num_scalar_prefetch=0,
          grid=(G,),
          in_specs=[
              pl.BlockSpec((1, C2, BHW), lambda n: (n, 0, 0)),
              pl.BlockSpec((1, C1, BHW), lambda n: (n, 0, 0)),
              pl.BlockSpec((Cmid, 9 * CC), lambda n: (0, 0)),
              pl.BlockSpec((Cmid, 1), lambda n: (0, 0)),
              pl.BlockSpec((Cout, 9 * Cmid), lambda n: (0, 0)),
              pl.BlockSpec((Cout, 1), lambda n: (0, 0)),
              pl.BlockSpec((9, BHW), lambda n: (0, 0)),
          ],
          out_specs=pl.BlockSpec((1, Cout, BHW), lambda n: (n, 0, 0)),
          scratch_shapes=[
              pltpu.VMEM((CC, BHW + 2 * PAD), jnp.float32),    # padded concat input
              pltpu.VMEM((9 * CC, BHW), jnp.float32),          # im2col for conv1
              pltpu.VMEM((Cmid, BHW + 2 * PAD), jnp.float32),  # padded h
              pltpu.VMEM((9 * Cmid, BHW), jnp.float32),        # im2col for conv2
          ],
      ),
      compiler_params=pltpu.CompilerParams(
          dimension_semantics=("parallel",)),
  )(x2f, x1f, w1k, b1, w2k, b2, masks)

  # (G, Cout, B*HW) -> (N, Cout, H, W); metadata-only when B == 1.
  out = out_flat.reshape(G, Cout, B, HW).transpose(0, 2, 1, 3)
  return out.reshape(N, Cout, H, W)


def up_reference(x1, x2, w1, cb1, g1, be1, w2, cb2, g2, be2, eps=1e-5):
  """Pure-JAX reference of the same forward (inference-mode BN)."""
  x1u = bilinear_upsample_x2_gather(x1)
  diffx = x2.shape[2] - x1u.shape[2]
  diffy = x2.shape[3] - x1u.shape[3]
  x1p = jnp.pad(x1u, ((0, 0), (0, 0),
                      (diffy // 2, diffy - diffy // 2),
                      (diffx // 2, diffx - diffx // 2)))
  x = jnp.concatenate([x2, x1p], axis=1)

  def conv(z, w, b):
    y = jax.lax.conv_general_dilated(
        z, w, (1, 1), ((1, 1), (1, 1)),
        dimension_numbers=('NCHW', 'OIHW', 'NCHW'))
    return y + b[None, :, None, None]

  def bn(y, g, be):
    return y / jnp.sqrt(1.0 + eps) * g[None, :, None, None] + be[None, :, None, None]

  h = jnp.maximum(bn(conv(x, w1, cb1), g1, be1), 0.0)
  return jnp.maximum(bn(conv(h, w2, cb2), g2, be2), 0.0)


if __name__ == "__main__":
  key = jax.random.PRNGKey(0)
  keys = jax.random.split(key, 10)

  # Up(in_dim=8, out_dim=4, bilinear=True): x1 and x2 each carry in_dim//2
  # channels; concat gives in_dim channels; mid_dim = in_dim // 2.
  in_dim, out_dim = 8, 4
  mid_dim = in_dim // 2
  N, H1, W1 = 4, 8, 8                       # x1 spatial (pre-upsample)
  H2, W2 = 2 * H1, 2 * W1                   # x2 spatial

  x1 = jax.random.normal(keys[0], (N, in_dim // 2, H1, W1), jnp.float32)
  x2 = jax.random.normal(keys[1], (N, in_dim // 2, H2, W2), jnp.float32)

  # convBlock parameters (deterministic synthetic init)
  w1 = 0.1 * jax.random.normal(keys[2], (mid_dim, in_dim, 3, 3), jnp.float32)
  cb1 = 0.1 * jax.random.normal(keys[3], (mid_dim,), jnp.float32)
  g1 = 1.0 + 0.1 * jax.random.normal(keys[4], (mid_dim,), jnp.float32)
  be1 = 0.1 * jax.random.normal(keys[5], (mid_dim,), jnp.float32)

  w2 = 0.1 * jax.random.normal(keys[6], (out_dim, mid_dim, 3, 3), jnp.float32)
  cb2 = 0.1 * jax.random.normal(keys[7], (out_dim,), jnp.float32)
  g2 = 1.0 + 0.1 * jax.random.normal(keys[8], (out_dim,), jnp.float32)
  be2 = 0.1 * jax.random.normal(keys[9], (out_dim,), jnp.float32)

  # Fold BN (running_mean=0, running_var=1, eps=1e-5): scale goes into the
  # conv weights, shift (beta + scale*bias) stays as the in-kernel epilogue add.
  eps = 1e-5
  scale1 = g1 / jnp.sqrt(1.0 + eps)
  shift1 = be1 + scale1 * cb1
  scale2 = g2 / jnp.sqrt(1.0 + eps)
  shift2 = be2 + scale2 * cb2

  # OIHW -> lane-dense (C_out, 9*C_in) with K index = (3*dy+dx)*C_in + c,
  # matching the kernel's tap-major im2col row ordering.  conv1's input
  # channels are already ordered [x2 | x1p] per torch.cat([x2, x1], dim=1).
  w1_k = jnp.transpose(w1 * scale1[:, None, None, None],
                       (0, 2, 3, 1)).reshape(mid_dim, 9 * in_dim)
  w2_k = jnp.transpose(w2 * scale2[:, None, None, None],
                       (0, 2, 3, 1)).reshape(out_dim, 9 * mid_dim)

  params = (w1_k, shift1[:, None], w2_k, shift2[:, None])

  out = up_forward(x1, x2, params)
  out = jax.block_until_ready(out)

  ref = up_reference(x1, x2, w1, cb1, g1, be1, w2, cb2, g2, be2)
  assert out.shape == (N, out_dim, H2, W2), out.shape
  assert jnp.allclose(out, ref, rtol=1e-3, atol=1e-3), \
      float(jnp.max(jnp.abs(out - ref)))

  print("KERNEL_OK")
</pallas_src>

<mosaic_0001>
module attributes {stable_mosaic.version = 11 : i64} {
  func.func @_up_conv_kernel(%arg0: i32, %arg1: memref<1x4x512xf32, #tpu.memory_space<vmem>>, %arg2: memref<1x4x512xf32, #tpu.memory_space<vmem>>, %arg3: memref<4x72xf32, #tpu.memory_space<vmem>>, %arg4: memref<4x1xf32, #tpu.memory_space<vmem>>, %arg5: memref<4x36xf32, #tpu.memory_space<vmem>>, %arg6: memref<4x1xf32, #tpu.memory_space<vmem>>, %arg7: memref<9x512xf32, #tpu.memory_space<vmem>>, %arg8: memref<1x4x512xf32, #tpu.memory_space<vmem>>, %arg9: memref<8x768xf32, #tpu.memory_space<vmem>>, %arg10: memref<72x512xf32, #tpu.memory_space<vmem>>, %arg11: memref<4x768xf32, #tpu.memory_space<vmem>>, %arg12: memref<36x512xf32, #tpu.memory_space<vmem>>) attributes {dimension_semantics = [#tpu.dimension_semantics<parallel>], iteration_bounds = array<i64: 2>, scalar_prefetch = 0 : i64, scratch_operands = 4 : i64, tpu.core_type = #tpu.core_type<tc>, window_params = [{transform_indices = @transform_0, window_bounds = array<i64: 1, 4, 512>}, {transform_indices = @transform_1, window_bounds = array<i64: 1, 4, 512>}, {pipeline_mode = #tpu.pipeline_mode<synchronous>, transform_indices = @transform_2, window_bounds = array<i64: 4, 72>}, {pipeline_mode = #tpu.pipeline_mode<synchronous>, transform_indices = @transform_3, window_bounds = array<i64: 4, 1>}, {pipeline_mode = #tpu.pipeline_mode<synchronous>, transform_indices = @transform_4, window_bounds = array<i64: 4, 36>}, {pipeline_mode = #tpu.pipeline_mode<synchronous>, transform_indices = @transform_5, window_bounds = array<i64: 4, 1>}, {pipeline_mode = #tpu.pipeline_mode<synchronous>, transform_indices = @transform_6, window_bounds = array<i64: 9, 512>}, {transform_indices = @transform_7, window_bounds = array<i64: 1, 4, 512>}]} {
    %cst = arith.constant 0.000000e+00 : f32
    %0 = vector.broadcast %cst : f32 to vector<8x128xf32>
    %c0 = arith.constant 0 : index
    %c0_0 = arith.constant 0 : index
    %1 = vector.load %arg9[%c0, %c0_0] : memref<8x768xf32, #tpu.memory_space<vmem>>, vector<8x128xf32>
    tpu.vector_store %arg9[%c0, %c0_0], %0 {strides = array<i32>} : memref<8x768xf32, #tpu.memory_space<vmem>>, vector<8x128xf32>,
    %cst_1 = arith.constant 0.000000e+00 : f32
    %2 = vector.broadcast %cst_1 : f32 to vector<8x128xf32>
    %c0_2 = arith.constant 0 : index
    %c640 = arith.constant 640 : index
    %3 = vector.load %arg9[%c0_2, %c640] : memref<8x768xf32, #tpu.memory_space<vmem>>, vector<8x128xf32>
    tpu.vector_store %arg9[%c0_2, %c640], %2 {strides = array<i32>} : memref<8x768xf32, #tpu.memory_space<vmem>>, vector<8x128xf32>,
    %c0_3 = arith.constant 0 : index
    %c0_4 = arith.constant 0 : index
    %c0_5 = arith.constant 0 : index
    %4 = vector.load %arg1[%c0_3, %c0_4, %c0_5] : memref<1x4x512xf32, #tpu.memory_space<vmem>>, vector<1x4x512xf32>
    %5 = vector.shape_cast %4 : vector<1x4x512xf32> to vector<4x512xf32>
    %c0_6 = arith.constant 0 : index
    %c128 = arith.constant 128 : index
    %6 = vector.load %arg9[%c0_6, %c128] : memref<8x768xf32, #tpu.memory_space<vmem>>, vector<4x512xf32>
    tpu.vector_store %arg9[%c0_6, %c128], %5 {strides = array<i32>} : memref<8x768xf32, #tpu.memory_space<vmem>>, vector<4x512xf32>,
    %c0_7 = arith.constant 0 : index
    %c0_8 = arith.constant 0 : index
    %c0_9 = arith.constant 0 : index
    %7 = vector.load %arg2[%c0_7, %c0_8, %c0_9] : memref<1x4x512xf32, #tpu.memory_space<vmem>>, vector<1x4x512xf32>
    %8 = vector.shape_cast %7 : vector<1x4x512xf32> to vector<4x512xf32>
    %c4 = arith.constant 4 : index
    %c128_10 = arith.constant 128 : index
    %9 = vector.load %arg9[%c4, %c128_10] : memref<8x768xf32, #tpu.memory_space<vmem>>, vector<4x512xf32>
    tpu.vector_store %arg9[%c4, %c128_10], %8 {strides = array<i32>} : memref<8x768xf32, #tpu.memory_space<vmem>>, vector<4x512xf32>,
    %cst_11 = arith.constant 0.000000e+00 : f32
    %10 = vector.broadcast %cst_11 : f32 to vector<4x128xf32>
    %c0_12 = arith.constant 0 : index
    %c0_13 = arith.constant 0 : index
    %11 = vector.load %arg11[%c0_12, %c0_13] : memref<4x768xf32, #tpu.memory_space<vmem>>, vector<4x128xf32>
    tpu.vector_store %arg11[%c0_12, %c0_13], %10 {strides = array<i32>} : memref<4x768xf32, #tpu.memory_space<vmem>>, vector<4x128xf32>,
    %cst_14 = arith.constant 0.000000e+00 : f32
    %12 = vector.broadcast %cst_14 : f32 to vector<4x128xf32>
    %c0_15 = arith.constant 0 : index
    %c640_16 = arith.constant 640 : index
    %13 = vector.load %arg11[%c0_15, %c640_16] : memref<4x768xf32, #tpu.memory_space<vmem>>, vector<4x128xf32>
    tpu.vector_store %arg11[%c0_15, %c640_16], %12 {strides = array<i32>} : memref<4x768xf32, #tpu.memory_space<vmem>>, vector<4x128xf32>,
    %c0_17 = arith.constant 0 : index
    %c0_18 = arith.constant 0 : index
    %14 = vector.load %arg7[%c0_17, %c0_18] : memref<9x512xf32, #tpu.memory_space<vmem>>, vector<1x512xf32>
    %c0_19 = arith.constant 0 : index
    %c111 = arith.constant 111 : index
    %15 = vector.load %arg9[%c0_19, %c111] : memref<8x768xf32, #tpu.memory_space<vmem>>, vector<8x512xf32>
    %16 = vector.broadcast %14 : vector<1x512xf32> to vector<8x512xf32>
    %17 = arith.mulf %16, %15 : vector<8x512xf32>
    %c0_20 = arith.constant 0 : index
    %c0_21 = arith.constant 0 : index
    %18 = vector.load %arg10[%c0_20, %c0_21] : memref<72x512xf32, #tpu.memory_space<vmem>>, vector<8x512xf32>
    tpu.vector_store %arg10[%c0_20, %c0_21], %17 {strides = array<i32>} : memref<72x512xf32, #tpu.memory_space<vmem>>, vector<8x512xf32>,
    %c1 = arith.constant 1 : index
    %c0_22 = arith.constant 0 : index
    %19 = vector.load %arg7[%c1, %c0_22] : memref<9x512xf32, #tpu.memory_space<vmem>>, vector<1x512xf32>
    %c0_23 = arith.constant 0 : index
    %c112 = arith.constant 112 : index
    %20 = vector.load %arg9[%c0_23, %c112] : memref<8x768xf32, #tpu.memory_space<vmem>>, vector<8x512xf32>
    %21 = vector.broadcast %19 : vector<1x512xf32> to vector<8x512xf32>
    %22 = arith.mulf %21, %20 : vector<8x512xf32>
    %c8 = arith.constant 8 : index
    %c0_24 = arith.constant 0 : index
    %23 = vector.load %arg10[%c8, %c0_24] : memref<72x512xf32, #tpu.memory_space<vmem>>, vector<8x512xf32>
    tpu.vector_store %arg10[%c8, %c0_24], %22 {strides = array<i32>} : memref<72x512xf32, #tpu.memory_space<vmem>>, vector<8x512xf32>,
    %c2 = arith.constant 2 : index
    %c0_25 = arith.constant 0 : index
    %24 = vector.load %arg7[%c2, %c0_25] : memref<9x512xf32, #tpu.memory_space<vmem>>, vector<1x512xf32>
    %c0_26 = arith.constant 0 : index
    %c113 = arith.constant 113 : index
    %25 = vector.load %arg9[%c0_26, %c113] : memref<8x768xf32, #tpu.memory_space<vmem>>, vector<8x512xf32>
    %26 = vector.broadcast %24 : vector<1x512xf32> to vector<8x512xf32>
    %27 = arith.mulf %26, %25 : vector<8x512xf32>
    %c16 = arith.constant 16 : index
    %c0_27 = arith.constant 0 : index
    %28 = vector.load %arg10[%c16, %c0_27] : memref<72x512xf32, #tpu.memory_space<vmem>>, vector<8x512xf32>
    tpu.vector_store %arg10[%c16, %c0_27], %27 {strides = array<i32>} : memref<72x512xf32, #tpu.memory_space<vmem>>, vector<8x512xf32>,
    %c3 = arith.constant 3 : index
    %c0_28 = arith.constant 0 : index
    %29 = vector.load %arg7[%c3, %c0_28] : memref<9x512xf32, #tpu.memory_space<vmem>>, vector<1x512xf32>
    %c0_29 = arith.constant 0 : index
    %c127 = arith.constant 127 : index
    %30 = vector.load %arg9[%c0_29, %c127] : memref<8x768xf32, #tpu.memory_space<vmem>>, vector<8x512xf32>
    %31 = vector.broadcast %29 : vector<1x512xf32> to vector<8x512xf32>
    %32 = arith.mulf %31, %30 : vector<8x512xf32>
    %c24 = arith.constant 24 : index
    %c0_30 = arith.constant 0 : index
    %33 = vector.load %arg10[%c24, %c0_30] : memref<72x512xf32, #tpu.memory_space<vmem>>, vector<8x512xf32>
    tpu.vector_store %arg10[%c24, %c0_30], %32 {strides = array<i32>} : memref<72x512xf32, #tpu.memory_space<vmem>>, vector<8x512xf32>,
    %c4_31 = arith.constant 4 : index
    %c0_32 = arith.constant 0 : index
    %34 = vector.load %arg7[%c4_31, %c0_32] : memref<9x512xf32, #tpu.memory_space<vmem>>, vector<1x512xf32>
    %c0_33 = arith.constant 0 : index
    %c128_34 = arith.constant 128 : index
    %35 = vector.load %arg9[%c0_33, %c128_34] : memref<8x768xf32, #tpu.memory_space<vmem>>, vector<8x512xf32>
    %36 = vector.broadcast %34 : vector<1x512xf32> to vector<8x512xf32>
    %37 = arith.mulf %36, %35 : vector<8x512xf32>
    %c32 = arith.constant 32 : index
    %c0_35 = arith.constant 0 : index
    %38 = vector.load %arg10[%c32, %c0_35] : memref<72x512xf32, #tpu.memory_space<vmem>>, vector<8x512xf32>
    tpu.vector_store %arg10[%c32, %c0_35], %37 {strides = array<i32>} : memref<72x512xf32, #tpu.memory_space<vmem>>, vector<8x512xf32>,
    %c5 = arith.constant 5 : index
    %c0_36 = arith.constant 0 : index
    %39 = vector.load %arg7[%c5, %c0_36] : memref<9x512xf32, #tpu.memory_space<vmem>>, vector<1x512xf32>
    %c0_37 = arith.constant 0 : index
    %c129 = arith.constant 129 : index
    %40 = vector.load %arg9[%c0_37, %c129] : memref<8x768xf32, #tpu.memory_space<vmem>>, vector<8x512xf32>
    %41 = vector.broadcast %39 : vector<1x512xf32> to vector<8x512xf32>
    %42 = arith.mulf %41, %40 : vector<8x512xf32>
    %c40 = arith.constant 40 : index
    %c0_38 = arith.constant 0 : index
    %43 = vector.load %arg10[%c40, %c0_38] : memref<72x512xf32, #tpu.memory_space<vmem>>, vector<8x512xf32>
    tpu.vector_store %arg10[%c40, %c0_38], %42 {strides = array<i32>} : memref<72x512xf32, #tpu.memory_space<vmem>>, vector<8x512xf32>,
    %c6 = arith.constant 6 : index
    %c0_39 = arith.constant 0 : index
    %44 = vector.load %arg7[%c6, %c0_39] : memref<9x512xf32, #tpu.memory_space<vmem>>, vector<1x512xf32>
    %c0_40 = arith.constant 0 : index
    %c143 = arith.constant 143 : index
    %45 = vector.load %arg9[%c0_40, %c143] : memref<8x768xf32, #tpu.memory_space<vmem>>, vector<8x512xf32>
    %46 = vector.broadcast %44 : vector<1x512xf32> to vector<8x512xf32>
    %47 = arith.mulf %46, %45 : vector<8x512xf32>
    %c48 = arith.constant 48 : index
    %c0_41 = arith.constant 0 : index
    %48 = vector.load %arg10[%c48, %c0_41] : memref<72x512xf32, #tpu.memory_space<vmem>>, vector<8x512xf32>
    tpu.vector_store %arg10[%c48, %c0_41], %47 {strides = array<i32>} : memref<72x512xf32, #tpu.memory_space<vmem>>, vector<8x512xf32>,
    %c7 = arith.constant 7 : index
    %c0_42 = arith.constant 0 : index
    %49 = vector.load %arg7[%c7, %c0_42] : memref<9x512xf32, #tpu.memory_space<vmem>>, vector<1x512xf32>
    %c0_43 = arith.constant 0 : index
    %c144 = arith.constant 144 : index
    %50 = vector.load %arg9[%c0_43, %c144] : memref<8x768xf32, #tpu.memory_space<vmem>>, vector<8x512xf32>
    %51 = vector.broadcast %49 : vector<1x512xf32> to vector<8x512xf32>
    %52 = arith.mulf %51, %50 : vector<8x512xf32>
    %c56 = arith.constant 56 : index
    %c0_44 = arith.constant 0 : index
    %53 = vector.load %arg10[%c56, %c0_44] : memref<72x512xf32, #tpu.memory_space<vmem>>, vector<8x512xf32>
    tpu.vector_store %arg10[%c56, %c0_44], %52 {strides = array<i32>} : memref<72x512xf32, #tpu.memory_space<vmem>>, vector<8x512xf32>,
    %c8_45 = arith.constant 8 : index
    %c0_46 = arith.constant 0 : index
    %54 = vector.load %arg7[%c8_45, %c0_46] : memref<9x512xf32, #tpu.memory_space<vmem>>, vector<1x512xf32>
    %c0_47 = arith.constant 0 : index
    %c145 = arith.constant 145 : index
    %55 = vector.load %arg9[%c0_47, %c145] : memref<8x768xf32, #tpu.memory_space<vmem>>, vector<8x512xf32>
    %56 = vector.broadcast %54 : vector<1x512xf32> to vector<8x512xf32>
    %57 = arith.mulf %56, %55 : vector<8x512xf32>
    %c64 = arith.constant 64 : index
    %c0_48 = arith.constant 0 : index
    %58 = vector.load %arg10[%c64, %c0_48] : memref<72x512xf32, #tpu.memory_space<vmem>>, vector<8x512xf32>
    tpu.vector_store %arg10[%c64, %c0_48], %57 {strides = array<i32>} : memref<72x512xf32, #tpu.memory_space<vmem>>, vector<8x512xf32>,
    %c0_49 = arith.constant 0 : index
    %c0_50 = arith.constant 0 : index
    %59 = vector.load %arg3[%c0_49, %c0_50] : memref<4x72xf32, #tpu.memory_space<vmem>>, vector<4x72xf32>
    %c0_51 = arith.constant 0 : index
    %c0_52 = arith.constant 0 : index
    %60 = vector.load %arg10[%c0_51, %c0_52] : memref<72x512xf32, #tpu.memory_space<vmem>>, vector<72x512xf32>
    %cst_53 = arith.constant dense<0.000000e+00> : vector<4x512xf32>
    %61 = tpu.matmul %59, %60, %cst_53 {dimension_numbers = #tpu.dot_dimension_numbers<[1], [0], [0], [1], [0, 0, 1, 1], [], []>} : vector<4x72xf32>, vector<72x512xf32>, vector<4x512xf32> -> vector<4x512xf32>
    %c0_54 = arith.constant 0 : index
    %c0_55 = arith.constant 0 : index
    %62 = vector.load %arg4[%c0_54, %c0_55] : memref<4x1xf32, #tpu.memory_space<vmem>>, vector<4x1xf32>
    %63 = vector.broadcast %62 : vector<4x1xf32> to vector<4x512xf32>
    %64 = arith.addf %61, %63 : vector<4x512xf32>
    %cst_56 = arith.constant 0.000000e+00 : f32
    %65 = vector.broadcast %cst_56 : f32 to vector<4x512xf32>
    %66 = arith.maximumf %64, %65 : vector<4x512xf32>
    %c0_57 = arith.constant 0 : index
    %c128_58 = arith.constant 128 : index
    %67 = vector.load %arg11[%c0_57, %c128_58] : memref<4x768xf32, #tpu.memory_space<vmem>>, vector<4x512xf32>
    tpu.vector_store %arg11[%c0_57, %c128_58], %66 {strides = array<i32>} : memref<4x768xf32, #tpu.memory_space<vmem>>, vector<4x512xf32>,
    %c0_59 = arith.constant 0 : index
    %c0_60 = arith.constant 0 : index
    %68 = vector.load %arg7[%c0_59, %c0_60] : memref<9x512xf32, #tpu.memory_space<vmem>>, vector<1x512xf32>
    %c0_61 = arith.constant 0 : index
    %c111_62 = arith.constant 111 : index
    %69 = vector.load %arg11[%c0_61, %c111_62] : memref<4x768xf32, #tpu.memory_space<vmem>>, vector<4x512xf32>
    %70 = vector.broadcast %68 : vector<1x512xf32> to vector<4x512xf32>
    %71 = arith.mulf %70, %69 : vector<4x512xf32>
    %c0_63 = arith.constant 0 : index
    %c0_64 = arith.constant 0 : index
    %72 = vector.load %arg12[%c0_63, %c0_64] : memref<36x512xf32, #tpu.memory_space<vmem>>, vector<4x512xf32>
    tpu.vector_store %arg12[%c0_63, %c0_64], %71 {strides = array<i32>} : memref<36x512xf32, #tpu.memory_space<vmem>>, vector<4x512xf32>,
    %c1_65 = arith.constant 1 : index
    %c0_66 = arith.constant 0 : index
    %73 = vector.load %arg7[%c1_65, %c0_66] : memref<9x512xf32, #tpu.memory_space<vmem>>, vector<1x512xf32>
    %c0_67 = arith.constant 0 : index
    %c112_68 = arith.constant 112 : index
    %74 = vector.load %arg11[%c0_67, %c112_68] : memref<4x768xf32, #tpu.memory_space<vmem>>, vector<4x512xf32>
    %75 = vector.broadcast %73 : vector<1x512xf32> to vector<4x512xf32>
    %76 = arith.mulf %75, %74 : vector<4x512xf32>
    %c4_69 = arith.constant 4 : index
    %c0_70 = arith.constant 0 : index
    %77 = vector.load %arg12[%c4_69, %c0_70] : memref<36x512xf32, #tpu.memory_space<vmem>>, vector<4x512xf32>
    tpu.vector_store %arg12[%c4_69, %c0_70], %76 {strides = array<i32>} : memref<36x512xf32, #tpu.memory_space<vmem>>, vector<4x512xf32>,
    %c2_71 = arith.constant 2 : index
    %c0_72 = arith.constant 0 : index
    %78 = vector.load %arg7[%c2_71, %c0_72] : memref<9x512xf32, #tpu.memory_space<vmem>>, vector<1x512xf32>
    %c0_73 = arith.constant 0 : index
    %c113_74 = arith.constant 113 : index
    %79 = vector.load %arg11[%c0_73, %c113_74] : memref<4x768xf32, #tpu.memory_space<vmem>>, vector<4x512xf32>
    %80 = vector.broadcast %78 : vector<1x512xf32> to vector<4x512xf32>
    %81 = arith.mulf %80, %79 : vector<4x512xf32>
    %c8_75 = arith.constant 8 : index
    %c0_76 = arith.constant 0 : index
    %82 = vector.load %arg12[%c8_75, %c0_76] : memref<36x512xf32, #tpu.memory_space<vmem>>, vector<4x512xf32>
    tpu.vector_store %arg12[%c8_75, %c0_76], %81 {strides = array<i32>} : memref<36x512xf32, #tpu.memory_space<vmem>>, vector<4x512xf32>,
    %c3_77 = arith.constant 3 : index
    %c0_78 = arith.constant 0 : index
    %83 = vector.load %arg7[%c3_77, %c0_78] : memref<9x512xf32, #tpu.memory_space<vmem>>, vector<1x512xf32>
    %c0_79 = arith.constant 0 : index
    %c127_80 = arith.constant 127 : index
    %84 = vector.load %arg11[%c0_79, %c127_80] : memref<4x768xf32, #tpu.memory_space<vmem>>, vector<4x512xf32>
    %85 = vector.broadcast %83 : vector<1x512xf32> to vector<4x512xf32>
    %86 = arith.mulf %85, %84 : vector<4x512xf32>
    %c12 = arith.constant 12 : index
    %c0_81 = arith.constant 0 : index
    %87 = vector.load %arg12[%c12, %c0_81] : memref<36x512xf32, #tpu.memory_space<vmem>>, vector<4x512xf32>
    tpu.vector_store %arg12[%c12, %c0_81], %86 {strides = array<i32>} : memref<36x512xf32, #tpu.memory_space<vmem>>, vector<4x512xf32>,
    %c4_82 = arith.constant 4 : index
    %c0_83 = arith.constant 0 : index
    %88 = vector.load %arg7[%c4_82, %c0_83] : memref<9x512xf32, #tpu.memory_space<vmem>>, vector<1x512xf32>
    %c0_84 = arith.constant 0 : index
    %c128_85 = arith.constant 128 : index
    %89 = vector.load %arg11[%c0_84, %c128_85] : memref<4x768xf32, #tpu.memory_space<vmem>>, vector<4x512xf32>
    %90 = vector.broadcast %88 : vector<1x512xf32> to vector<4x512xf32>
    %91 = arith.mulf %90, %89 : vector<4x512xf32>
    %c16_86 = arith.constant 16 : index
    %c0_87 = arith.constant 0 : index
    %92 = vector.load %arg12[%c16_86, %c0_87] : memref<36x512xf32, #tpu.memory_space<vmem>>, vector<4x512xf32>
    tpu.vector_store %arg12[%c16_86, %c0_87], %91 {strides = array<i32>} : memref<36x512xf32, #tpu.memory_space<vmem>>, vector<4x512xf32>,
    %c5_88 = arith.constant 5 : index
    %c0_89 = arith.constant 0 : index
    %93 = vector.load %arg7[%c5_88, %c0_89] : memref<9x512xf32, #tpu.memory_space<vmem>>, vector<1x512xf32>
    %c0_90 = arith.constant 0 : index
    %c129_91 = arith.constant 129 : index
    %94 = vector.load %arg11[%c0_90, %c129_91] : memref<4x768xf32, #tpu.memory_space<vmem>>, vector<4x512xf32>
    %95 = vector.broadcast %93 : vector<1x512xf32> to vector<4x512xf32>
    %96 = arith.mulf %95, %94 : vector<4x512xf32>
    %c20 = arith.constant 20 : index
    %c0_92 = arith.constant 0 : index
    %97 = vector.load %arg12[%c20, %c0_92] : memref<36x512xf32, #tpu.memory_space<vmem>>, vector<4x512xf32>
    tpu.vector_store %arg12[%c20, %c0_92], %96 {strides = array<i32>} : memref<36x512xf32, #tpu.memory_space<vmem>>, vector<4x512xf32>,
    %c6_93 = arith.constant 6 : index
    %c0_94 = arith.constant 0 : index
    %98 = vector.load %arg7[%c6_93, %c0_94] : memref<9x512xf32, #tpu.memory_space<vmem>>, vector<1x512xf32>
    %c0_95 = arith.constant 0 : index
    %c143_96 = arith.constant 143 : index
    %99 = vector.load %arg11[%c0_95, %c143_96] : memref<4x768xf32, #tpu.memory_space<vmem>>, vector<4x512xf32>
    %100 = vector.broadcast %98 : vector<1x512xf32> to vector<4x512xf32>
    %101 = arith.mulf %100, %99 : vector<4x512xf32>
    %c24_97 = arith.constant 24 : index
    %c0_98 = arith.constant 0 : index
    %102 = vector.load %arg12[%c24_97, %c0_98] : memref<36x512xf32, #tpu.memory_space<vmem>>, vector<4x512xf32>
    tpu.vector_store %arg12[%c24_97, %c0_98], %101 {strides = array<i32>} : memref<36x512xf32, #tpu.memory_space<vmem>>, vector<4x512xf32>,
    %c7_99 = arith.constant 7 : index
    %c0_100 = arith.constant 0 : index
    %103 = vector.load %arg7[%c7_99, %c0_100] : memref<9x512xf32, #tpu.memory_space<vmem>>, vector<1x512xf32>
    %c0_101 = arith.constant 0 : index
    %c144_102 = arith.constant 144 : index
    %104 = vector.load %arg11[%c0_101, %c144_102] : memref<4x768xf32, #tpu.memory_space<vmem>>, vector<4x512xf32>
    %105 = vector.broadcast %103 : vector<1x512xf32> to vector<4x512xf32>
    %106 = arith.mulf %105, %104 : vector<4x512xf32>
    %c28 = arith.constant 28 : index
    %c0_103 = arith.constant 0 : index
    %107 = vector.load %arg12[%c28, %c0_103] : memref<36x512xf32, #tpu.memory_space<vmem>>, vector<4x512xf32>
    tpu.vector_store %arg12[%c28, %c0_103], %106 {strides = array<i32>} : memref<36x512xf32, #tpu.memory_space<vmem>>, vector<4x512xf32>,
    %c8_104 = arith.constant 8 : index
    %c0_105 = arith.constant 0 : index
    %108 = vector.load %arg7[%c8_104, %c0_105] : memref<9x512xf32, #tpu.memory_space<vmem>>, vector<1x512xf32>
    %c0_106 = arith.constant 0 : index
    %c145_107 = arith.constant 145 : index
    %109 = vector.load %arg11[%c0_106, %c145_107] : memref<4x768xf32, #tpu.memory_space<vmem>>, vector<4x512xf32>
    %110 = vector.broadcast %108 : vector<1x512xf32> to vector<4x512xf32>
    %111 = arith.mulf %110, %109 : vector<4x512xf32>
    %c32_108 = arith.constant 32 : index
    %c0_109 = arith.constant 0 : index
    %112 = vector.load %arg12[%c32_108, %c0_109] : memref<36x512xf32, #tpu.memory_space<vmem>>, vector<4x512xf32>
    tpu.vector_store %arg12[%c32_108, %c0_109], %111 {strides = array<i32>} : memref<36x512xf32, #tpu.memory_space<vmem>>, vector<4x512xf32>,
    %c0_110 = arith.constant 0 : index
    %c0_111 = arith.constant 0 : index
    %113 = vector.load %arg5[%c0_110, %c0_111] : memref<4x36xf32, #tpu.memory_space<vmem>>, vector<4x36xf32>
    %c0_112 = arith.constant 0 : index
    %c0_113 = arith.constant 0 : index
    %114 = vector.load %arg12[%c0_112, %c0_113] : memref<36x512xf32, #tpu.memory_space<vmem>>, vector<36x512xf32>
    %cst_114 = arith.constant dense<0.000000e+00> : vector<4x512xf32>
    %115 = tpu.matmul %113, %114, %cst_114 {dimension_numbers = #tpu.dot_dimension_numbers<[1], [0], [0], [1], [0, 0, 1, 1], [], []>} : vector<4x36xf32>, vector<36x512xf32>, vector<4x512xf32> -> vector<4x512xf32>
    %c0_115 = arith.constant 0 : index
    %c0_116 = arith.constant 0 : index
    %116 = vector.load %arg6[%c0_115, %c0_116] : memref<4x1xf32, #tpu.memory_space<vmem>>, vector<4x1xf32>
    %117 = vector.broadcast %116 : vector<4x1xf32> to vector<4x512xf32>
    %118 = arith.addf %115, %117 : vector<4x512xf32>
    %cst_117 = arith.constant 0.000000e+00 : f32
    %119 = vector.broadcast %cst_117 : f32 to vector<4x512xf32>
    %120 = arith.maximumf %118, %119 : vector<4x512xf32>
    %c0_118 = arith.constant 0 : index
    %c0_119 = arith.constant 0 : index
    %c0_120 = arith.constant 0 : index
    %121 = vector.load %arg8[%c0_118, %c0_119, %c0_120] : memref<1x4x512xf32, #tpu.memory_space<vmem>>, vector<1x4x512xf32>
    %122 = vector.shape_cast %121 : vector<1x4x512xf32> to vector<4x512xf32>
    %123 = vector.shape_cast %120 : vector<4x512xf32> to vector<1x4x512xf32>
    tpu.vector_store %arg8[%c0_118, %c0_119, %c0_120], %123 {strides = array<i32>} : memref<1x4x512xf32, #tpu.memory_space<vmem>>, vector<1x4x512xf32>,
    return
  }
  func.func @transform_0(%arg0: i32) -> (i32, i32, i32) {
    %c0_i32 = arith.constant 0 : i32
    %c0_i32_0 = arith.constant 0 : i32
    %c0_i32_1 = arith.constant 0 : i32
    return %arg0, %c0_i32, %c0_i32_0 : i32, i32, i32
  }
  func.func @transform_1(%arg0: i32) -> (i32, i32, i32) {
    %c0_i32 = arith.constant 0 : i32
    %c0_i32_0 = arith.constant 0 : i32
    %c0_i32_1 = arith.constant 0 : i32
    return %arg0, %c0_i32, %c0_i32_0 : i32, i32, i32
  }
  func.func @transform_2(%arg0: i32) -> (i32, i32) {
    %c0_i32 = arith.constant 0 : i32
    %c0_i32_0 = arith.constant 0 : i32
    %c0_i32_1 = arith.constant 0 : i32
    return %c0_i32, %c0_i32_0 : i32, i32
  }
  func.func @transform_3(%arg0: i32) -> (i32, i32) {
    %c0_i32 = arith.constant 0 : i32
    %c0_i32_0 = arith.constant 0 : i32
    %c0_i32_1 = arith.constant 0 : i32
    return %c0_i32, %c0_i32_0 : i32, i32
  }
  func.func @transform_4(%arg0: i32) -> (i32, i32) {
    %c0_i32 = arith.constant 0 : i32
    %c0_i32_0 = arith.constant 0 : i32
    %c0_i32_1 = arith.constant 0 : i32
    return %c0_i32, %c0_i32_0 : i32, i32
  }
  func.func @transform_5(%arg0: i32) -> (i32, i32) {
    %c0_i32 = arith.constant 0 : i32
    %c0_i32_0 = arith.constant 0 : i32
    %c0_i32_1 = arith.constant 0 : i32
    return %c0_i32, %c0_i32_0 : i32, i32
  }
  func.func @transform_6(%arg0: i32) -> (i32, i32) {
    %c0_i32 = arith.constant 0 : i32
    %c0_i32_0 = arith.constant 0 : i32
    %c0_i32_1 = arith.constant 0 : i32
    return %c0_i32, %c0_i32_0 : i32, i32
  }
  func.func @transform_7(%arg0: i32) -> (i32, i32, i32) {
    %c0_i32 = arith.constant 0 : i32
    %c0_i32_0 = arith.constant 0 : i32
    %c0_i32_1 = arith.constant 0 : i32
    return %arg0, %c0_i32, %c0_i32_0 : i32, i32, i32
  }
}

</mosaic_0001>

<bundles_post_ra>
// kernel: tpu_custom_call.1
= control target key start
LH: loop header
LB: loop body
LE: loop exit
PB: predicated region body
PF: predicated region fallthrough
CT: control target
= control target key end

     0   :  { %s2887_s0 = inlined_call_operand.hbm [shape: f32[2,4,512], index: 0, kind: input, shape index: {}]   ;;  %s2888_s1 = inlined_call_operand.hbm [shape: f32[2,4,512], index: 1, kind: input, shape index: {}]   ;;  %s2889_s2 = inlined_call_operand.vmem [shape: f32[4,72], index: 2, kind: input, shape index: {}]   ;;  %s2890_s3 = inlined_call_operand.vmem [shape: f32[4,1], index: 3, kind: input, shape index: {}]   ;;  %s2891_s4 = inlined_call_operand.vmem [shape: f32[4,36], index: 4, kind: input, shape index: {}]   ;;  %s2892_s5 = inlined_call_operand.vmem [shape: f32[4,1], index: 5, kind: input, shape index: {}]   ;;  %s2893_s6 = inlined_call_operand.hbm [shape: f32[9,512], index: 6, kind: input, shape index: {}]   ;;  %s2894_s7 = inlined_call_operand.hbm [shape: f32[2,4,512], index: 7, kind: output, shape index: {}]  }
   0x1   :  { %2902 = sst [smem:[#allocation20_spill]] %s2893_s6 }
   0x2   :  { %12 = vsyncpa [#allocation7], 0 }
   0x3   :  { %14 = vsyncpa [#allocation7 + $0x1], 0 }
   0x4   :  { %15 = vsyncpa [#allocation10], 0 }
   0x5   :  { %17 = vsyncpa [#allocation10 + $0x1], 0 }
   0x6   :  { %18 = vsyncpa [#allocation8], 0 }
   0x7   :  { %20 = vsyncpa [#allocation8 + $0x1], 0  ;;  %s2325_s24 = smov 0   ;;  %s2327_s25 = smov 0  }
   0x8   :  { %s2329_s26 = smov 0   ;;  %s2331_s27 = smov 0  }
   0x9 LB: > { %2903 = sst [smem:[#allocation17_spill]] %s2263_s26  ;;  %s2346_s28 = sadd.s32 4294967295, %s2267_s27   ;;  %s2267_s27 = sphi %s2331_s27, %s2921_s27   ;;  %s2263_s26 = sphi %s2329_s26, %s2923_s26   ;;  %s2259_s25 = sphi %s2327_s25, %s2925_s25   ;;  %s2255_s24 = sphi %s2325_s24, %s2924_s24  }
   0xa   : > { %s1943_s29 = sadd.s32 4294967294, %s2267_s27   ;;  %p46_p0 = scmp.ne.s32.totalorder %s2259_s25, %s2255_s24 }
   0xb   : > { %p2895_p1 = scmp.eq.s32.totalorder %s2346_s28, 0  ;;  %p207_p3 = scmp.eq.s32.totalorder %s1943_s29, 1 }
   0xc   : > { %p1944_p5 = scmp.ge.s32.totalorder %s2267_s27, 1  ;;  %p214_p7 = scmp.lt.s32.totalorder %s2267_s27, 3 }
   0xd   : > { %p2355_p4 = por %p2895_p1, %p46_p0  ;;  %p2360_p6 = por %p207_p3, %p46_p0 }
   0xe   : > { %p2365_p8 = pnand %p1944_p5, %p214_p7  ;;  %s2269_s10 = smov [#allocation11]  }
   0xf   : > { %s2904_s30 = scalar_select %p2355_p4, 1, 0 }
  0x10   : > { %s2905_s8 = scalar_select %p2360_p6, 1, 0 }
  0x11   : > { %s2906_s9 = scalar_select %p2365_p8, 1, 0 }
  0x12   : > { %s238_s11 = sshll.u32 %s2269_s10, 4  ;;  %p2032_p9 = pneg %p2365_p8  ;;  %s2369_s11 = int_to_ptr.vmem [resolvable:$true] %s238_s11 }
  0x13   : > { %s2381_s13 = sadd.s32 1, %s2267_s27   ;;  %s33_s14 = sadd.s32 1, %s2263_s26 }
  0x14   : > { %p2376_p11 = pnand %p2032_p9, %p2895_p1  ;;  %2908 = sst [smem:[#allocation18_spill]] %s2381_s13 }
  0x15   : > { %s30_s15 = ssub.s32 %s2267_s27, %s2381_s13  ;;  %s2909_s6 = sld [smem:[#allocation20_spill]] }
  0x16   : > { %p2107_p13 = pneg %p2376_p11 }
  0x1b   : > { %s2105_s18 = scalar_lea.hbm %s2909_s6, 1024 }
  0x1c   : > { %p2106_p12 = scmp.ne.s32.totalorder %s2909_s6, %s2105_s18  ;;  %p2112_p5 = scmp.lt.u32.totalorder %s2105_s18, %s2909_s6 }
  0x1e   : > { %p2108_p0 = pnand %p2107_p13, %p2106_p12 }
  0x20   : > { %p2109_p3 = pneg %p2108_p0 }
  0x22   : > { %p2114_p7 = pnand %p2112_p5, %p2109_p3 }
  0x24   : > { %2117 = shalt.err (!%p2114_p7)
}
  0x25   : > { %s2118_s23 = scalar_lea.vmem %s2369_s11, 1024  ;;  %p2126_p2 = scmp.lt.s32.totalorder %s2369_s11, %s2369_s11 }
  0x26   : > { %p2119_p9 = scmp.ne.s32.totalorder %s2369_s11, %s2118_s23  ;;  %p2127_p6 = scmp.lt.s32.totalorder %s2118_s23, %s2118_s23 }
  0x28   : > { %p2121_p10 = pnand %p2119_p9, %p2107_p13  ;;  %p2128_p4 = por %p2127_p6, %p2126_p2 }
  0x2a   : > { %p2122_p1 = pneg %p2121_p10 }
  0x2c   : > { %p2129_p8 = pnand %p2128_p4, %p2122_p1 }
  0x2e   : > { %2132 = shalt.err (!%p2129_p8)
}
  0x2f   : > { %s2270_s29 = smov 512   ;;  %s2271_s10 = smov 32  }
  0x30   : > { %2035 = dma.hbm_to_vmem [thread:$0]  (!%p2376_p11), %s2909_s6, 1024, %s2369_s11, [#allocation10], %s2270_s29, %s2270_s29, %s2271_s10  }
  0x31   : > { %p31_p2 = scmp.eq.s32.totalorder %s30_s15, 0  ;;  %p40_p1 = scmp.ne.s32.totalorder %s2263_s26, %s2259_s25 }
  0x32   : > { %p41_p4 = scmp.eq.s32.totalorder %s2267_s27, 0  ;;  %p2048_p6 = scmp.lt.s32.totalorder %s2267_s27, 2 }
  0x33   : > { %s2412_s18 = scalar_select %p31_p2, %s2263_s26, %s33_s14  }
  0x34   : > { %p42_p8 = por %p41_p4, %p40_p1  ;;  %p2911_p10 = scmp.eq.s32.totalorder %s2346_s28, 1 }
  0x35   : > { %2910 = sst [smem:[#allocation19_spill]] %s2412_s18  ;;  %s252_s20 = sand.u32 1, %s2263_s26  }
  0x36   : > { %p2416_p12 = por %p2911_p10, %p40_p1  ;;  %s1971_s21 = sshll.u32 %s2267_s27, 8 }
  0x37   : > { %s2422_s22 = sshll.u32 %s252_s20, 4  ;;  %s2427_s11 = scalar_lea.hbm %s2887_s0, %s1971_s21 }
  0x38   : > { %s2912_s19 = scalar_select %p2416_p12, 1, 0 }
  0x39   : > { %s256_s14 = scalar_lea.vmem [#allocation6], %s2422_s22  ;;  %p2430_p11 = pnand %p2048_p6, %p42_p8 }
  0x3a   : > { %s264_s15 = sshll.u32 %s256_s14, 4  ;;  %s2439_s17 = scalar_lea.hbm %s2888_s1, %s1971_s21  ;;  %s2434_s15 = int_to_ptr.vmem [resolvable:$true] %s264_s15 }
  0x3b   : > { %s253_s12 = scalar_lea.sflag [#allocation7], %s252_s20  ;;  %s2133_s23 = scalar_lea.hbm %s2427_s11, 256 }
  0x3c   : > { %p2134_p13 = scmp.ne.s32.totalorder %s2427_s11, %s2133_s23  ;;  %p2135_p0 = pneg %p2430_p11 }
  0x3d   : > { %s2138_s18 = scalar_lea.hbm %s2887_s0, 512  ;;  %p2139_p7 = scmp.lt.u32.totalorder %s2427_s11, %s2887_s0 }
  0x3e   : > { %p2136_p3 = pnand %p2135_p0, %p2134_p13  ;;  %p2140_p9 = scmp.lt.u32.totalorder %s2138_s18, %s2133_s23 }
  0x3f   : > { %p2142_p1 = scmp.lt.u32.totalorder %s2133_s23, %s2427_s11 }
  0x40   : > { %p2137_p5 = pneg %p2136_p3  ;;  %p2141_p2 = por %p2140_p9, %p2139_p7 }
  0x42   : > { %p2143_p4 = por %p2142_p1, %p2141_p2 }
  0x44   : > { %p2144_p6 = pnand %p2143_p4, %p2137_p5 }
  0x46   : > { %2147 = shalt.err (!%p2144_p6)
}
  0x47   : > { %s2148_s20 = scalar_lea.vmem %s2434_s15, 256  ;;  %s2272_s6 = smov [#allocation6]  }
  0x48   : > { %p2149_p8 = scmp.ne.s32.totalorder %s2434_s15, %s2148_s20  ;;  %s2153_s21 = sshll.u32 %s2272_s6, 4  ;;  %s2154_s21 = int_to_ptr.vmem [resolvable:$false] %s2153_s21 }
  0x49   : > { %s2155_s26 = scalar_lea.vmem %s2154_s21, 512  ;;  %p2156_p3 = scmp.lt.s32.totalorder %s2434_s15, %s2154_s21 }
  0x4a   : > { %p2151_p10 = pnand %p2149_p8, %p2135_p0  ;;  %p2157_p7 = scmp.lt.s32.totalorder %s2155_s26, %s2148_s20 }
  0x4c   : > { %p2152_p13 = pneg %p2151_p10  ;;  %p2158_p9 = por %p2157_p7, %p2156_p3 }
  0x4e   : > { %p2159_p2 = pnand %p2158_p9, %p2152_p13 }
  0x50   : > { %2162 = shalt.err (!%p2159_p2)
}
  0x51   : > { %2039 = dma.hbm_to_vmem [thread:$0]  (!%p2430_p11), %s2427_s11, 256, %s2434_s15, %s253_s12  }
  0x52   : > { %s271_s13 = sand.u32 1, %s2267_s27   ;;  %s275_s18 = scalar_lea.vmem [#allocation9], %s2422_s22 }
  0x53   : > { %s283_s10 = sshll.u32 %s275_s18, 4  ;;  %s272_s16 = scalar_lea.sflag [#allocation10], %s271_s13  ;;  %s284_s10 = int_to_ptr.vmem [resolvable:$true] %s283_s10 }
  0x54   : > { %s2163_s23 = scalar_lea.hbm %s2439_s17, 256  ;;  %s2168_s6 = scalar_lea.hbm %s2888_s1, 512 }
  0x55   : > { %p2164_p5 = scmp.ne.s32.totalorder %s2439_s17, %s2163_s23  ;;  %p2169_p6 = scmp.lt.u32.totalorder %s2439_s17, %s2888_s1 }
  0x56   : > { %p2170_p8 = scmp.lt.u32.totalorder %s2168_s6, %s2163_s23  ;;  %p2172_p13 = scmp.lt.u32.totalorder %s2163_s23, %s2439_s17 }
  0x57   : > { %p2166_p1 = pnand %p2164_p5, %p2135_p0 }
  0x58   : > { %p2171_p10 = por %p2170_p8, %p2169_p6 }
  0x59   : > { %p2167_p4 = pneg %p2166_p1 }
  0x5a   : > { %p2173_p3 = por %p2172_p13, %p2171_p10 }
  0x5c   : > { %p2174_p7 = pnand %p2173_p3, %p2167_p4 }
  0x5e   : > { %2177 = shalt.err (!%p2174_p7)
}
  0x5f   : > { %s2178_s22 = scalar_lea.vmem %s284_s10, 256  ;;  %s2273_s11 = smov [#allocation9]  }
  0x60   : > { %p2179_p9 = scmp.ne.s32.totalorder %s284_s10, %s2178_s22  ;;  %s2183_s15 = sshll.u32 %s2273_s11, 4  ;;  %s2184_s15 = int_to_ptr.vmem [resolvable:$false] %s2183_s15 }
  0x61   : > { %s2185_s12 = scalar_lea.vmem %s2184_s15, 512  ;;  %p2186_p1 = scmp.lt.s32.totalorder %s284_s10, %s2184_s15 }
  0x62   : > { %p2181_p2 = pnand %p2179_p9, %p2135_p0  ;;  %p2187_p12 = scmp.lt.s32.totalorder %s2185_s12, %s2178_s22 }
  0x64   : > { %p2182_p5 = pneg %p2181_p2  ;;  %p2188_p6 = por %p2187_p12, %p2186_p1 }
  0x66   : > { %p2189_p8 = pnand %p2188_p6, %p2182_p5 }
  0x68   : > { %2192 = shalt.err (!%p2189_p8)
}
  0x69   : > { %2042 = dma.hbm_to_vmem [thread:$0]  (!%p2430_p11), %s2439_s17, 256, %s284_s10, %s272_s16  }
  0x6a   : > { %p2914_p4 = scmp.ne.s32.totalorder %s2906_s9, 0 }
  0x6b   : > { %s2490_s13 = sand.u32 (!%p2914_p4), 1, %s2259_s25   ;;  %p2915_p12 = scmp.ne.s32.totalorder (!%p2914_p4), %s2904_s30, 0 }
  0x6c   : > { %292 = sbr.rel (%p2914_p4) target bundleno = 987 (0x3db), region = 48  ;;  %s2493_s18 = sshll.u32 (!%p2914_p4), %s2490_s13, 4 }
  0x6d   : > { %s295_s23 = scalar_lea.sflag (!%p2914_p4), [#allocation7], %s2490_s13  ;;  %s298_s14 = scalar_lea.vmem (!%p2914_p4), [#allocation6], %s2493_s18 }
  0x73   : > { %2238 = dma.done.wait (%p2915_p12), %s295_s23, 256  }
  0x74   : > { %2240 = vsyncadd (%p2915_p12), %s295_s23, 4294967040  ;;  %s303_s9 = sand.u32 1, %s2346_s28   ;;  %s307_s17 = scalar_lea.vmem [#allocation9], %s2493_s18 }
  0x75   : > { %s304_s29 = scalar_lea.sflag [#allocation10], %s303_s9 }
  0x76   : > { %2242 = dma.done.wait (%p2915_p12), %s304_s29, 256  }
  0x77   : > { %2244 = vsyncadd (%p2915_p12), %s304_s29, 4294967040  ;;  %p2916_p11 = scmp.eq.s32.totalorder %s2346_s28, 0 }
  0x79   : > { %2246 = dma.done.wait (%p2916_p11), [#allocation10], 1024   ;;  %p2917_p0 = pmov %p2916_p11 }
  0x7a   : > { %v2274_v0 = vmov 0.0   ;;  %s2275_s10 = smov 16   ;;  %s2276_s16 = smov 17   ;;  %v350_v1 = vld [vmem:[%s298_s14 + $0x8] sm:$0xff]  ;;  %v349_v3 = vld [vmem:[%s298_s14] sm:$0xff]  ;;  %v2283_v13 = vmov 0   ;;  %v382_v16 = vlaneseq }
  0x7b   : > { %2248 = vsyncadd (%p2917_p0), [#allocation10], 4294966272  ;;  %467 = vrot.lane.b32.xlu1 %v2274_v0, %s2275_s10  ;;  %373 = vst [vmem:[#allocation4] sm:$0xf] %v2274_v0  ;;  %407 = vrot.lane.b32.xlu0 %v2274_v0, %s2276_s16  ;;  %v362_v2 = vld [vmem:[%s307_s17 + $0x8] sm:$0xff]  ;;  %v361_v5 = vld [vmem:[%s307_s17] sm:$0xff]  ;;  %v354_v6 = vcombine.high %v350_v1, %v350_v1  ;;  %v353_v7 = vcombine.high %v349_v3, %v349_v3 }
  0x7c   : > { %374 = vst [vmem:[#allocation4 + $0x14] sm:$0xf] %v2274_v0  ;;  %1000 = vmatprep.mubr.f32.mxu0 %v2274_v0  ;;  %1071 = vmatprep.mubr.f32.mxu1 %v2274_v0  ;;  %359 = vst [vmem:[#allocation2 + $0x18] sm:$0xf] %v350_v1  ;;  %v366_v4 = vcombine.low %v362_v2, %v362_v2  ;;  %v365_v8 = vcombine.low %v361_v5, %v361_v5  ;;  %s2277_s30 = smov 15   ;;  %s2278_s20 = smov 1  }
  0x7d   : > { %372 = vst [vmem:[#allocation2 + $0x20] sm:$0xf0] %v362_v2  ;;  %357 = vst [vmem:[#allocation2 + $0x8] sm:$0xf] %v349_v3  ;;  %s2279_s6 = smov 127   ;;  %s2280_s21 = smov 113   ;;  %2096 = vset.pattern.permute.xlu0 %v2283_v13 }
  0x7e   : > { %370 = vst [vmem:[#allocation2 + $0x10] sm:$0xf0] %v361_v5  ;;  %371 = vst [vmem:[#allocation2 + $0x18] sm:$0xf0] %v366_v4  ;;  %s2281_s26 = smov 112   ;;  %s2282_s22 = smov 111  }
  0x7f   : > { %360 = vst [vmem:[#allocation2 + $0x20] sm:$0xf] %v354_v6  ;;  %358 = vst [vmem:[#allocation2 + $0x10] sm:$0xf] %v353_v7  ;;  %v926_v14 = vld [vmem:[%s2890_s3] sm:$0xf] }
  0x80   : > { %369 = vst [vmem:[#allocation2 + $0x8] sm:$0xf0] %v365_v8  ;;  %v383_v18 = vshrl.u32 %v382_v16, 7  ;;  %v375_v22 = vld [vmem:[#allocation11] ss:$8 sm:$0xf] }
  0x81   : > { %v435_v25 = vld [vmem:[#allocation11 + $0x1] ss:$8 sm:$0xf]  ;;  %vm417_vm0 = vcmask 138240   ;;  %vm477_vm1 = vcmask 130048   ;;  %vm537_vm2 = vcmask 121856  }
  0x82   : > { %v2606_v21 = vsub.s32 0, %v383_v18  ;;  %v2608_v23 = vsub.s32 1, %v383_v18  ;;  %v2610_v26 = vsub.s32 2, %v383_v18  ;;  %v2612_v28 = vsub.s32 3, %v383_v18  ;;  %p2918_p13 = scmp.ne.s32.totalorder %s2912_s19, 0 }
  0x83   : > { %v495_v63 = vld [vmem:[#allocation11 + $0x2] ss:$8 sm:$0xf]  ;;  %v555_v2 = vld [vmem:[#allocation11 + $0x3] ss:$8 sm:$0xf] }
  0x84   : > { %v385_v29 = vrot.slane %v375_v22, %v2606_v21  ;;  %v445_v30 = vrot.slane %v435_v25, %v2606_v21  ;;  %v389_v31 = vrot.slane %v375_v22, %v2608_v23  ;;  %v449_v32 = vrot.slane %v435_v25, %v2608_v23 }
  0x85   : > { %v2519_v9 = vld [vmem:[#allocation2 + $0x18] sm:$0xff]  ;;  %v393_v36 = vrot.slane %v375_v22, %v2610_v26  ;;  %v397_v38 = vrot.slane %v375_v22, %v2612_v28  ;;  %v453_v41 = vrot.slane %v435_v25, %v2610_v26  ;;  %v457_v42 = vrot.slane %v435_v25, %v2612_v28 }
  0x86   : > { %413 = vrot.lane.b32.xlu1 %v2519_v9, %s2276_s16  ;;  %v2527_v11 = vld [vmem:[#allocation2 + $0x20] sm:$0xff]  ;;  %v2529_v12 = vld [vmem:[#allocation2 + $0x10] sm:$0xff]  ;;  %v509_v4 = vrot.slane %v495_v63, %v2608_v23  ;;  %v569_v5 = vrot.slane %v555_v2, %v2608_v23  ;;  %vm597_vm3 = vcmask 7168   ;;  %v513_v13 = vrot.slane %v495_v63, %v2610_v26 }
  0x87   : > { %v2523_v10 = vld [vmem:[#allocation2 + $0x8] sm:$0xff]  ;;  %v573_v18 = vrot.slane %v555_v2, %v2610_v26  ;;  %vm692_vm4 = vcmask 1039360   ;;  %vm752_vm5 = vcmask 924672   ;;  %vm812_vm6 = vcmask 916480  }
  0x88   : > { %409 = vrot.lane.b32.xlu0 %v2523_v10, %s2276_s16  ;;  %vm872_vm7 = vcmask 908288   ;;  %vm932_vm8 = vcmask 588800   ;;  %vm1657_vm9 = vcmask 1043456   ;;  %vm1653_vm10 = vcmask 293888  }
  0x8a   : > { %415 = vrot.lane.b32.xlu1 %v2527_v11, %s2276_s16 }
  0x8c   : > { %411 = vrot.lane.b32.xlu0 %v2529_v12, %s2276_s16 }
  0x8e   : > { %471 = vrot.lane.b32.xlu1 %v2529_v12, %s2275_s10 }
  0x90   : > { %469 = vrot.lane.b32.xlu0 %v2523_v10, %s2275_s10 }
  0x92   : > { %475 = vrot.lane.b32.xlu1 %v2527_v11, %s2275_s10 }
  0x94   : > { %473 = vrot.lane.b32.xlu0 %v2519_v9, %s2275_s10 }
  0x96   : > { %531 = vrot.lane.b32.xlu1 %v2529_v12, %s2277_s30 }
  0x98   : > { %529 = vrot.lane.b32.xlu0 %v2523_v10, %s2277_s30 }
  0x9a   : > { %535 = vrot.lane.b32.xlu1 %v2527_v11, %s2277_s30 }
  0x9c   : > { %533 = vrot.lane.b32.xlu0 %v2519_v9, %s2277_s30 }
  0x9e   : > { %591 = vrot.lane.b32.xlu1 %v2529_v12, %s2278_s20 }
  0xa0   : > { %589 = vrot.lane.b32.xlu0 %v2523_v10, %s2278_s20 }
  0xa2   : > { %595 = vrot.lane.b32.xlu1 %v2527_v11, %s2278_s20 }
  0xa4   : > { %593 = vrot.lane.b32.xlu0 %v2519_v9, %s2278_s20 }
  0xa6   : > { %587 = vrot.lane.b32.xlu1 %v2274_v0, %s2278_s20 }
  0xa8   : > { %527 = vrot.lane.b32.xlu0 %v2274_v0, %s2277_s30 }
  0xaa   : > { %686 = vrot.lane.b32.xlu1 %v2519_v9, %s2279_s6 }
  0xac   : > { %684 = vrot.lane.b32.xlu0 %v2529_v12, %s2279_s6 }
  0xae   : > { %690 = vrot.lane.b32.xlu1 %v2274_v0, %s2279_s6 }
  0xb0   : > { %688 = vrot.lane.b32.xlu0 %v2527_v11, %s2279_s6 }
  0xb2   : > { %744 = vrot.lane.b32.xlu1 %v2529_v12, %s2280_s21 }
  0xb4   : > { %682 = vrot.lane.b32.xlu0 %v2523_v10, %s2279_s6 }
  0xb6   : > { %748 = vrot.lane.b32.xlu1 %v2527_v11, %s2280_s21 }
  0xb8   : > { %746 = vrot.lane.b32.xlu0 %v2519_v9, %s2280_s21 }
  0xba   : > { %804 = vrot.lane.b32.xlu1 %v2529_v12, %s2281_s26 }
  0xbc   : > { %750 = vrot.lane.b32.xlu0 %v2274_v0, %s2280_s21 }
  0xbe   : > { %808 = vrot.lane.b32.xlu1 %v2527_v11, %s2281_s26 }
  0xc0   : > { %806 = vrot.lane.b32.xlu0 %v2519_v9, %s2281_s26 }
  0xc2   : > { %742 = vrot.lane.b32.xlu1 %v2523_v10, %s2280_s21 }
  0xc4   : > { %810 = vrot.lane.b32.xlu0 %v2274_v0, %s2281_s26 }
  0xc6   : > { %864 = vrot.lane.b32.xlu1 %v2529_v12, %s2282_s22 }
  0xc8   : > { %802 = vrot.lane.b32.xlu0 %v2523_v10, %s2281_s26 }
  0xca   : > { %868 = vrot.lane.b32.xlu1 %v2527_v11, %s2282_s22 }
  0xcc   : > { %866 = vrot.lane.b32.xlu0 %v2519_v9, %s2282_s22 }
  0xce   : > { %862 = vrot.lane.b32.xlu1 %v2523_v10, %s2282_s22 }
  0xd0   : > { %870 = vrot.lane.b32.xlu0 %v2274_v0, %s2282_s22 }
  0xd4   : > { %929 = vperm.xlu0 %2096, %v926_v14   ;;  %v517_v14 = vrot.slane %v495_v63, %v2612_v28 }
  0xed   : > { %v468_v15 = vpop.permute.xlu1 %467  ;;  %v408_v17 = vpop.permute.xlu0 %407 }
  0xf8   : > { %v414_v19 = vpop.permute.xlu1 %413 }
  0xfa   : > { %v410_v20 = vpop.permute.xlu0 %409 }
  0xfb   : > { %v418_v33 = vsel %vm417_vm0, %v408_v17, %v410_v20 }
  0xfc   : > { %v416_v24 = vpop.permute.xlu1 %415  ;;  %v426_v43 = vmul.f32 %v418_v33, %v385_v29  ;;  %v615_v33 = vld [vmem:[#allocation11 + $0x4] ss:$8 sm:$0xf] }
  0xfd   : > { %v421_v47 = vsel %vm417_vm0, %v414_v19, %v416_v24 }
  0xfe   : > { %v412_v27 = vpop.permute.xlu0 %411  ;;  %v429_v57 = vmul.f32 %v421_v47, %v397_v38 }
  0xff   : > { %v419_v34 = vsel %vm417_vm0, %v410_v20, %v412_v27  ;;  %v420_v48 = vsel %vm417_vm0, %v412_v27, %v414_v19  ;;  %v577_v19 = vrot.slane %v555_v2, %v2612_v28 }
 0x100   : > { %v472_v35 = vpop.permute.xlu1 %471  ;;  %v427_v45 = vmul.f32 %v419_v34, %v389_v31  ;;  %v428_v55 = vmul.f32 %v420_v48, %v393_v36  ;;  %v565_v31 = vrot.slane %v555_v2, %v2606_v21 }
 0x102   : > { %v470_v37 = vpop.permute.xlu0 %469 }
 0x103   : > { %v478_v39 = vsel %vm477_vm1, %v468_v15, %v470_v37  ;;  %v479_v40 = vsel %vm477_vm1, %v470_v37, %v472_v35 }
 0x104   : > { %v486_v44 = vmul.f32 %v478_v39, %v445_v30  ;;  %v487_v46 = vmul.f32 %v479_v40, %v449_v32  ;;  %v476_v49 = vpop.permute.xlu1 %475  ;;  %v505_v32 = vrot.slane %v495_v63, %v2606_v21  ;;  %v650_v39 = vld [vmem:[#allocation11 + $0x5] ss:$8 sm:$0xf] }
 0x105   : > { %v664_v48 = vrot.slane %v650_v39, %v2608_v23 }
 0x106   : > { %v474_v50 = vpop.permute.xlu0 %473  ;;  %v1974_v51 = vpack.c.bf16 %v487_v46, %v427_v45  ;;  %v1976_v52 = vpack.c.bf16 %v486_v44, %v426_v43  ;;  %v628_v44 = vrot.slane %v615_v33, %v2608_v23 }
 0x107   : > { %v480_v53 = vsel %vm477_vm1, %v472_v35, %v474_v50  ;;  %v481_v54 = vsel %vm477_vm1, %v474_v50, %v476_v49 }
 0x108   : > { %v488_v56 = vmul.f32 %v480_v53, %v453_v41  ;;  %1975 = vmatprep.subr.bf16.mxu0 %v1974_v51  ;;  %v489_v58 = vmul.f32 %v481_v54, %v457_v42  ;;  %v532_v59 = vpop.permute.xlu1 %531  ;;  %v636_v53 = vrot.slane %v615_v33, %v2612_v28  ;;  %v632_v54 = vrot.slane %v615_v33, %v2610_v26 }
 0x109   : > { %1977 = vmatpush1.bf16.msra.mxu0 %v1976_v52  ;;  %v642_v52 = vmul.f32 %v628_v44, %v2529_v12  ;;  %v624_v12 = vrot.slane %v615_v33, %v2606_v21 }
 0x10a   : > { %v530_v60 = vpop.permute.xlu0 %529  ;;  %v1990_v61 = vpack.c.bf16 %v489_v58, %v429_v57  ;;  %v1992_v62 = vpack.c.bf16 %v488_v56, %v428_v55  ;;  %v668_v57 = vrot.slane %v650_v39, %v2610_v26  ;;  %v672_v58 = vrot.slane %v650_v39, %v2612_v28 }
 0x10b   : > { %v539_v6 = vsel %vm537_vm2, %v530_v60, %v532_v59  ;;  %v643_v63 = vmul.f32 %v632_v54, %v2519_v9 }
 0x10c   : > { %1991 = vmatprep.subr.bf16.mxu1 %v1990_v61  ;;  %v536_v1 = vpop.permute.xlu1 %535  ;;  %v547_v16 = vmul.f32 %v539_v6, %v509_v4 }
 0x10d   : > { %1993 = vmatpush1.bf16.msra.mxu1 %v1992_v62  ;;  %v644_v62 = vmul.f32 %v636_v53, %v2527_v11 }
 0x10e   : > { %v534_v3 = vpop.permute.xlu0 %533 }
 0x10f   : > { %v540_v20 = vsel %vm537_vm2, %v532_v59, %v534_v3  ;;  %v541_v22 = vsel %vm537_vm2, %v534_v3, %v536_v1 }
 0x110   : > { %v592_v7 = vpop.permute.xlu1 %591  ;;  %v548_v34 = vmul.f32 %v540_v20, %v513_v13  ;;  %v549_v35 = vmul.f32 %v541_v22, %v517_v14  ;;  %v641_v14 = vmul.f32 %v624_v12, %v2523_v10  ;;  %v770_v20 = vld [vmem:[#allocation11 + $0x7] ss:$8 sm:$0xf] }
 0x112   : > { %v590_v8 = vpop.permute.xlu0 %589 }
 0x113   : > { %v599_v15 = vsel %vm597_vm3, %v590_v8, %v592_v7 }
 0x114   : > { %v607_v17 = vmul.f32 %v599_v15, %v569_v5  ;;  %v596_v24 = vpop.permute.xlu1 %595  ;;  %v660_v5 = vrot.slane %v650_v39, %v2606_v21 }
 0x116   : > { %v594_v25 = vpop.permute.xlu0 %593  ;;  %v1978_v27 = vpack.c.bf16 %v607_v17, %v547_v16 }
 0x117   : > { %v600_v29 = vsel %vm597_vm3, %v592_v7, %v594_v25  ;;  %v601_v30 = vsel %vm597_vm3, %v594_v25, %v596_v24  ;;  %v784_v25 = vrot.slane %v770_v20, %v2608_v23 }
 0x118   : > { %v608_v36 = vmul.f32 %v600_v29, %v573_v18  ;;  %v609_v37 = vmul.f32 %v601_v30, %v577_v19  ;;  %1979 = vmatprep.subr.bf16.mxu0 %v1978_v27  ;;  %v588_v38 = vpop.permute.xlu1 %587  ;;  %v710_v18 = vld [vmem:[#allocation11 + $0x6] ss:$8 sm:$0xf] }
 0x119   : > { %v598_v40 = vsel %vm597_vm3, %v588_v38, %v590_v8  ;;  %v724_v24 = vrot.slane %v710_v18, %v2608_v23  ;;  %v732_v30 = vrot.slane %v710_v18, %v2612_v28 }
 0x11a   : > { %v528_v41 = vpop.permute.xlu0 %527  ;;  %v1994_v42 = vpack.c.bf16 %v609_v37, %v549_v35  ;;  %v1996_v43 = vpack.c.bf16 %v608_v36, %v548_v34  ;;  %v606_v45 = vmul.f32 %v598_v40, %v565_v31  ;;  %v788_v31 = vrot.slane %v770_v20, %v2610_v26 }
 0x11b   : > { %v538_v46 = vsel %vm537_vm2, %v528_v41, %v530_v60  ;;  %v792_v36 = vrot.slane %v770_v20, %v2612_v28  ;;  %v728_v37 = vrot.slane %v710_v18, %v2610_v26 }
 0x11c   : > { %v546_v47 = vmul.f32 %v538_v46, %v505_v32  ;;  %1995 = vmatprep.subr.bf16.mxu1 %v1994_v42  ;;  %v687_v49 = vpop.permute.xlu1 %686  ;;  %v720_v46 = vrot.slane %v710_v18, %v2606_v21 }
 0x11d   : > { %1997 = vmatpush1.bf16.msra.mxu1 %v1996_v43 }
 0x11e   : > { %v685_v50 = vpop.permute.xlu0 %684  ;;  %v1980_v51 = vpack.c.bf16 %v606_v45, %v546_v47 }
 0x11f   : > { %v694_v55 = vsel %vm692_vm4, %v685_v50, %v687_v49 }
 0x120   : > { %v702_v56 = vmul.f32 %v694_v55, %v664_v48  ;;  %1981 = vmatpush1.bf16.msra.mxu0 %v1980_v51  ;;  %v691_v59 = vpop.permute.xlu1 %690  ;;  %v780_v48 = vrot.slane %v770_v20, %v2606_v21 }
 0x122   : > { %v689_v60 = vpop.permute.xlu0 %688  ;;  %v1982_v61 = vpack.c.bf16 %v702_v56, %v642_v52  ;;  %v830_v52 = vld [vmem:[#allocation11 + $0x20] ss:$8 sm:$0xf] }
 0x123   : > { %v695_v1 = vsel %vm692_vm4, %v687_v49, %v689_v60  ;;  %v696_v2 = vsel %vm692_vm4, %v689_v60, %v691_v59  ;;  %v844_v59 = vrot.slane %v830_v52, %v2608_v23  ;;  %v840_v12 = vrot.slane %v830_v52, %v2606_v21 }
 0x124   : > { %v703_v3 = vmul.f32 %v695_v1, %v668_v57  ;;  %v704_v4 = vmul.f32 %v696_v2, %v672_v58  ;;  %1983 = vmatprep.subr.bf16.mxu0 %v1982_v61  ;;  %v745_v6 = vpop.permute.xlu1 %744  ;;  %v852_v2 = vrot.slane %v830_v52, %v2612_v28 }
 0x126   : > { %v683_v7 = vpop.permute.xlu0 %682  ;;  %v1998_v8 = vpack.c.bf16 %v704_v4, %v644_v62  ;;  %v2000_v13 = vpack.c.bf16 %v703_v3, %v643_v63  ;;  %v848_v3 = vrot.slane %v830_v52, %v2610_v26 }
 0x127   : > { %v693_v11 = vsel %vm692_vm4, %v683_v7, %v685_v50 }
 0x128   : > { %v701_v9 = vmul.f32 %v693_v11, %v660_v5  ;;  %1999 = vmatprep.subr.bf16.mxu1 %v1998_v8  ;;  %v749_v15 = vpop.permute.xlu1 %748 }
 0x129   : > { %2001 = vmatpush1.bf16.msra.mxu1 %v2000_v13 }
 0x12a   : > { %v747_v16 = vpop.permute.xlu0 %746  ;;  %v1984_v17 = vpack.c.bf16 %v701_v9, %v641_v14  ;;  %v889_v14 = vld [vmem:[%s2889_s2] sm:$0xf] }
 0x12b   : > { %v754_v10 = vsel %vm752_vm5, %v745_v6, %v747_v16  ;;  %v755_v40 = vsel %vm752_vm5, %v747_v16, %v749_v15  ;;  %v1505_v16 = vld [vmem:[#allocation4 + $0x14] sm:$0xf] }
 0x12c   : > { %1985 = vmatpush1.bf16.msra.mxu0 %v1984_v17  ;;  %v805_v19 = vpop.permute.xlu1 %804  ;;  %v762_v33 = vmul.f32 %v754_v10, %v724_v24  ;;  %v763_v49 = vmul.f32 %v755_v40, %v728_v37 }
 0x12e   : > { %v751_v22 = vpop.permute.xlu0 %750 }
 0x12f   : > { %v756_v38 = vsel %vm752_vm5, %v749_v15, %v751_v22  ;;  %v1381_v15 = vld [vmem:[#allocation4 + $0x14] sm:$0xf] }
 0x130   : > { %v809_v27 = vpop.permute.xlu1 %808  ;;  %v764_v45 = vmul.f32 %v756_v38, %v732_v30  ;;  %1416 = vrot.lane.b32.xlu1 %v1381_v15, %s2279_s6  ;;  %v1340_v22 = vld [vmem:[#allocation11 + $0x4] ss:$8 sm:$0xf] }
 0x131   : > { %v1359_v40 = vrot.slane %v1340_v22, %v2612_v28 }
 0x132   : > { %v807_v29 = vpop.permute.xlu0 %806 }
 0x133   : > { %v814_v32 = vsel %vm812_vm6, %v805_v19, %v807_v29  ;;  %v815_v34 = vsel %vm812_vm6, %v807_v29, %v809_v27 }
 0x134   : > { %v822_v35 = vmul.f32 %v814_v32, %v784_v25  ;;  %v743_v39 = vpop.permute.xlu1 %742  ;;  %v823_v43 = vmul.f32 %v815_v34, %v788_v31  ;;  %1540 = vrot.lane.b32.xlu1 %v1505_v16, %s2281_s26  ;;  %v1347_v31 = vrot.slane %v1340_v22, %v2606_v21 }
 0x135   : > { %v753_v50 = vsel %vm752_vm5, %v743_v39, %v745_v6 }
 0x136   : > { %v811_v41 = vpop.permute.xlu0 %810  ;;  %v1986_v42 = vpack.c.bf16 %v822_v35, %v762_v33  ;;  %v2004_v56 = vpack.c.bf16 %v823_v43, %v763_v49  ;;  %v761_v57 = vmul.f32 %v753_v50, %v720_v46  ;;  %v1355_v35 = vrot.slane %v1340_v22, %v2610_v26 }
 0x137   : > { %v816_v44 = vsel %vm812_vm6, %v809_v27, %v811_v41 }
 0x138   : > { %v824_v47 = vmul.f32 %v816_v44, %v792_v36  ;;  %1987 = vmatprep.subr.bf16.mxu0 %v1986_v42  ;;  %v865_v51 = vpop.permute.xlu1 %864  ;;  %v1351_v36 = vrot.slane %v1340_v22, %v2608_v23 }
 0x13a   : > { %v803_v53 = vpop.permute.xlu0 %802  ;;  %v2002_v54 = vpack.c.bf16 %v824_v47, %v764_v45 }
 0x13b   : > { %v813_v55 = vsel %vm812_vm6, %v803_v53, %v805_v19  ;;  %v1449_v53 = vld [vmem:[#allocation4 + $0x14] sm:$0xf] }
 0x13c   : > { %v821_v58 = vmul.f32 %v813_v55, %v780_v48  ;;  %2003 = vmatprep.subr.bf16.mxu1 %v2002_v54  ;;  %v869_v60 = vpop.permute.xlu1 %868  ;;  %v1573_v54 = vld [vmem:[#allocation4 + $0x14] sm:$0xf]  ;;  %v1647_v55 = vld [vmem:[%s2892_s5] sm:$0xf] }
 0x13d   : > { %2005 = vmatpush1.bf16.msra.mxu1 %v2004_v56 }
 0x13e   : > { %v867_v61 = vpop.permute.xlu0 %866  ;;  %v1988_v62 = vpack.c.bf16 %v821_v58, %v761_v57 }
 0x13f   : > { %v874_v63 = vsel %vm872_vm7, %v865_v51, %v867_v61  ;;  %v875_v5 = vsel %vm872_vm7, %v867_v61, %v869_v60 }
 0x140   : > { %v882_v1 = vmul.f32 %v874_v63, %v844_v59  ;;  %1989 = vmatpush1.bf16.msra.mxu0 %v1988_v62  ;;  %v863_v4 = vpop.permute.xlu1 %862  ;;  %v883_v9 = vmul.f32 %v875_v5, %v848_v3  ;;  %v1272_v5 = vld [vmem:[#allocation11 + $0x3] ss:$8 sm:$0xf] }
 0x141   : > { %v873_v6 = vsel %vm872_vm7, %v863_v4, %v865_v51  ;;  %v1284_v15 = vrot.slane %v1272_v5, %v2608_v23 }
 0x142   : > { %952 = vmatprep.subr.mxu0 %v882_v1  ;;  %v871_v7 = vpop.permute.xlu0 %870  ;;  %v881_v8 = vmul.f32 %v873_v6, %v840_v12  ;;  %v2756_v12 = vld [vmem:[#allocation11 + $0x1] ss:$8 sm:$0xf] }
 0x143   : > { %v876_v13 = vsel %vm872_vm7, %v869_v60, %v871_v7  ;;  %v1164_v3 = vrot.slane %v2756_v12, %v2610_v26  ;;  %v1168_v4 = vrot.slane %v2756_v12, %v2612_v28 }
 0x144   : > { %v884_v11 = vmul.f32 %v876_v13, %v852_v2  ;;  %953 = vmatpush1.msra.mxu0 %v881_v8 }
 0x145   : > { %1958 = vmatmul.mubr.msk.f32.vlgmr.msra.gmra.mrb[0].mxu0 %vm932_vm8, %v889_v14 }
 0x146   : > { %1023 = vmatprep.subr.mxu1 %v884_v11  ;;  %1734 = vmatprep.mubr.f32.mxu0 %v2274_v0 }
 0x147   : > { %1024 = vmatpush1.msra.mxu1 %v883_v9  ;;  %v1280_v9 = vrot.slane %v1272_v5, %v2606_v21 }
 0x148   : > { %1959 = vmatmul.mubr.msk.f32.vlgmr.msra.gmra.mrb[0].mxu1 %vm932_vm8, %v889_v14 }
 0x149   : > { %1805 = vmatprep.mubr.f32.mxu1 %v2274_v0 }
 0x153   : > { %v930_v17 = vpop.permute.xlu0 %929 }
 0x1a2   : > { %v2746_v56 = vpop.permute.xlu1 %1416 }
 0x1a6   : > { %v2748_v57 = vpop.permute.xlu1 %1540 }
 0x218   : > { %v1002_v18 = vpop.f32.mrb[0].mxu0 }
 0x219   : > { %v1003_v19 = vadd.f32 %v1002_v18, %v930_v17  ;;  %v1004_v20 = vpop.f32.mrb[1].mxu0 }
 0x21a   : > { %v1005_v24 = vadd.f32 %v1004_v20, %v930_v17 }
 0x21b   : > { %v1073_v25 = vpop.f32.mrb[0].mxu1  ;;  %v1078_v10 = vmax.f32 %v1003_v19, 0.0 }
 0x21c   : > { %v1074_v27 = vadd.f32 %v1073_v25, %v930_v17  ;;  %v1075_v29 = vpop.f32.mrb[1].mxu1  ;;  %v1079_v30 = vmax.f32 %v1005_v24, 0.0 }
 0x21d   : > { %v1076_v0 = vadd.f32 %v1075_v29, %v930_v17  ;;  %v1092_v29 = vld [vmem:[#allocation11] ss:$8 sm:$0xf] }
 0x21e   : > { %v1080_v32 = vmax.f32 %v1074_v27, 0.0  ;;  %v2694_v33 = vcombine.low %v1078_v10, %v1079_v30  ;;  %v2103_v37 = vcombine.low %v1079_v30, %v1079_v30  ;;  %v1288_v10 = vrot.slane %v1272_v5, %v2610_v26 }
 0x21f   : > { %v1081_v34 = vmax.f32 %v1076_v0, 0.0  ;;  %v1292_v27 = vrot.slane %v1272_v5, %v2612_v28 }
 0x220   : > { %1090 = vst [vmem:[#allocation4 + $0x4] sm:$0xff] %v2694_v33  ;;  %v1370_v38 = vmul.f32 %v1347_v31, %v2694_v33  ;;  %v1371_v43 = vmul.f32 %v2103_v37, %v1351_v36 }
 0x221   : > { %v1087_v39 = vcombine.low %v1080_v32, %v1081_v34  ;;  %v2104_v41 = vcombine.low %v1081_v34, %v1081_v34 }
 0x222   : > { %1374 = vst [vmem:[#allocation5 + $0x40] sm:$0xf] %v1370_v38  ;;  %1375 = vst [vmem:[#allocation5 + $0x48] sm:$0xf] %v1371_v43  ;;  %v1104_v38 = vrot.slane %v1092_v29, %v2608_v23 }
 0x223   : > { %1091 = vst [vmem:[#allocation4 + $0xc] sm:$0xff] %v1087_v39  ;;  %v1372_v42 = vmul.f32 %v1355_v35, %v1087_v39  ;;  %v1373_v44 = vmul.f32 %v2104_v41, %v1359_v40 }
 0x225   : > { %1376 = vst [vmem:[#allocation5 + $0x50] sm:$0xf] %v1372_v42  ;;  %1377 = vst [vmem:[#allocation5 + $0x58] sm:$0xf] %v1373_v44 }
 0x227   : > { %v1149_v45 = vld [vmem:[#allocation4] sm:$0xff] }
 0x228   : > { %1178 = vrot.lane.b32.xlu0 %v1149_v45, %s2275_s10  ;;  %v1176_v50 = vcombine.high %v1149_v45, %v1149_v45 }
 0x22a   : > { %v1150_v46 = vld [vmem:[#allocation4 + $0x8] sm:$0xff]  ;;  %v1151_v47 = vld [vmem:[#allocation4 + $0x10] sm:$0xf] }
 0x22b   : > { %1182 = vrot.lane.b32.xlu1 %v1150_v46, %s2275_s10  ;;  %v1275_v48 = vld [vmem:[#allocation4 + $0x10] sm:$0xf]  ;;  %v1177_v49 = vcombine.high %v1150_v46, %v1150_v46 }
 0x22c   : > { %1122 = vrot.lane.b32.xlu0 %v1149_v45, %s2276_s16  ;;  %v1095_v51 = vld [vmem:[#allocation4 + $0x10] sm:$0xf] }
 0x22d   : > { %v1219_v52 = vld [vmem:[#allocation4 + $0x10] sm:$0xf] }
 0x22f   : > { %1186 = vrot.lane.b32.xlu1 %v1151_v47, %s2275_s10  ;;  %v1108_v47 = vrot.slane %v1092_v29, %v2610_v26 }
 0x230   : > { %1408 = vrot.lane.b32.xlu0 %v2694_v33, %s2279_s6 }
 0x233   : > { %1306 = vrot.lane.b32.xlu1 %v1150_v46, %s2278_s20 }
 0x234   : > { %1476 = vrot.lane.b32.xlu0 %v2694_v33, %s2280_s21 }
 0x237   : > { %1310 = vrot.lane.b32.xlu1 %v1275_v48, %s2278_s20  ;;  %v1112_v48 = vrot.slane %v1092_v29, %v2612_v28 }
 0x238   : > { %1184 = vrot.lane.b32.xlu0 %v1177_v49, %s2275_s10 }
 0x23b   : > { %1302 = vrot.lane.b32.xlu1 %v1149_v45, %s2278_s20 }
 0x23c   : > { %1304 = vrot.lane.b32.xlu0 %v1176_v50, %s2278_s20 }
 0x23f   : > { %1126 = vrot.lane.b32.xlu1 %v1150_v46, %s2276_s16 }
 0x240   : > { %1308 = vrot.lane.b32.xlu0 %v1177_v49, %s2278_s20 }
 0x243   : > { %1130 = vrot.lane.b32.xlu1 %v1095_v51, %s2276_s16 }
 0x244   : > { %1124 = vrot.lane.b32.xlu0 %v1176_v50, %s2276_s16 }
 0x247   : > { %1250 = vrot.lane.b32.xlu1 %v1150_v46, %s2277_s30 }
 0x248   : > { %1128 = vrot.lane.b32.xlu0 %v1177_v49, %s2276_s16  ;;  %s346_s16 = scalar_lea.vmem [#allocation12], %s2493_s18 }
 0x24b   : > { %1254 = vrot.lane.b32.xlu1 %v1219_v52, %s2277_s30 }
 0x24c   : > { %1248 = vrot.lane.b32.xlu0 %v1176_v50, %s2277_s30 }
 0x24f   : > { %1246 = vrot.lane.b32.xlu1 %v1149_v45, %s2277_s30 }
 0x250   : > { %1252 = vrot.lane.b32.xlu0 %v1177_v49, %s2277_s30  ;;  %v1216_v49 = vld [vmem:[#allocation11 + $0x2] ss:$8 sm:$0xf]  ;;  %s1841_s30 = sshll.u32 %s346_s16, 4  ;;  %s2845_s30 = int_to_ptr.vmem [resolvable:$true] %s1841_s30 }
 0x251   : > { %v1232_v5 = vrot.slane %v1216_v49, %v2610_v26 }
 0x253   : > { %1412 = vrot.lane.b32.xlu1 %v1087_v39, %s2279_s6 }
 0x254   : > { %1410 = vrot.lane.b32.xlu0 %v2103_v37, %s2279_s6 }
 0x257   : > { %1536 = vrot.lane.b32.xlu1 %v1087_v39, %s2281_s26 }
 0x258   : > { %1414 = vrot.lane.b32.xlu0 %v2104_v41, %s2279_s6 }
 0x25b   : > { %1532 = vrot.lane.b32.xlu1 %v2694_v33, %s2281_s26 }
 0x25c   : > { %1534 = vrot.lane.b32.xlu0 %v2103_v37, %s2281_s26 }
 0x25f   : > { %1480 = vrot.lane.b32.xlu1 %v1087_v39, %s2280_s21 }
 0x260   : > { %1538 = vrot.lane.b32.xlu0 %v2104_v41, %s2281_s26  ;;  %s1827_s26 = scalar_lea.sflag [#allocation8], %s2490_s13 }
 0x263   : > { %1180 = vrot.lane.b32.xlu1 %v1176_v50, %s2275_s10  ;;  %s1973_s10 = sshll.u32 %s2346_s28, 8  ;;  %s2284_s28 = smov [#allocation12]  }
 0x264   : > { %1478 = vrot.lane.b32.xlu0 %v2103_v37, %s2280_s21  ;;  %s2197_s18 = sshll.u32 %s2284_s28, 4  ;;  %s2198_s18 = int_to_ptr.vmem [resolvable:$false] %s2197_s18 }
 0x265   : > { %s2199_s11 = scalar_lea.vmem %s2198_s18, 512  ;;  %p2200_p9 = scmp.lt.s32.totalorder %s2845_s30, %s2198_s18 }
 0x267   : > { %1484 = vrot.lane.b32.xlu1 %v1449_v53, %s2280_s21 }
 0x268   : > { %1482 = vrot.lane.b32.xlu0 %v2104_v41, %s2280_s21  ;;  %s2843_s21 = scalar_lea.hbm %s2894_s7, %s1973_s10 }
 0x26b   : > { %1602 = vrot.lane.b32.xlu1 %v2103_v37, %s2282_s22  ;;  %v1100_v37 = vrot.slane %v1092_v29, %v2606_v21 }
 0x26c   : > { %1604 = vrot.lane.b32.xlu0 %v1087_v39, %s2282_s22 }
 0x26f   : > { %1606 = vrot.lane.b32.xlu1 %v2104_v41, %s2282_s22 }
 0x270   : > { %1608 = vrot.lane.b32.xlu0 %v1573_v54, %s2282_s22 }
 0x273   : > { %1600 = vrot.lane.b32.xlu1 %v2694_v33, %s2282_s22  ;;  %s2193_s22 = scalar_lea.vmem %s2845_s30, 256 }
 0x274   : > { %1650 = vperm.xlu0 %2096, %v1647_v55   ;;  %p2194_p10 = scmp.ne.s32.totalorder %s2845_s30, %s2193_s22  ;;  %p2201_p2 = scmp.lt.s32.totalorder %s2199_s11, %s2193_s22 }
 0x276   : > { %p2195_p3 = pnand %p2194_p10, %p2918_p13  ;;  %p2202_p5 = por %p2201_p2, %p2200_p9 }
 0x278   : > { %p2196_p7 = pneg %p2195_p3 }
 0x27a   : > { %p2203_p1 = pnand %p2202_p5, %p2196_p7 }
 0x29a   : > { %v2750_v58 = vpop.permute.xlu0 %1178 }
 0x29d   : > { %v2752_v59 = vpop.permute.xlu1 %1182 }
 0x29e   : > { %v1123_v60 = vpop.permute.xlu0 %1122 }
 0x2a1   : > { %v1187_v61 = vpop.permute.xlu1 %1186 }
 0x2a2   : > { %v2754_v62 = vpop.permute.xlu0 %1408 }
 0x2a5   : > { %v1307_v63 = vpop.permute.xlu1 %1306 }
 0x2a6   : > { %v2758_v1 = vpop.permute.xlu0 %1476 }
 0x2a9   : > { %v1311_v2 = vpop.permute.xlu1 %1310 }
 0x2aa   : > { %v1185_v6 = vpop.permute.xlu0 %1184 }
 0x2ab   : > { %v1190_v7 = vsel %vm477_vm1, %v2752_v59, %v1185_v6  ;;  %v1191_v8 = vsel %vm477_vm1, %v1185_v6, %v1187_v61  ;;  %v1236_v6 = vrot.slane %v1216_v49, %v2612_v28 }
 0x2ac   : > { %v1198_v13 = vmul.f32 %v1190_v7, %v1164_v3  ;;  %v1199_v14 = vmul.f32 %v1191_v8, %v1168_v4  ;;  %v1378_v8 = vld [vmem:[#allocation11 + $0x5] ss:$8 sm:$0xf] }
 0x2ad   : > { %v1303_v11 = vpop.permute.xlu1 %1302  ;;  %v1394_v29 = vrot.slane %v1378_v8, %v2610_v26 }
 0x2ae   : > { %v1206_v16 = vrot.slane %v1198_v13, 4  ;;  %v1207_v17 = vrot.slane %v1199_v14, 4  ;;  %v1305_v18 = vpop.permute.xlu0 %1304 }
 0x2af   : > { %v1312_v19 = vsel %vm597_vm3, %v1303_v11, %v1305_v18  ;;  %v1313_v20 = vsel %vm597_vm3, %v1305_v18, %v1307_v63  ;;  %v1386_v18 = vrot.slane %v1378_v8, %v2606_v21 }
 0x2b0   : > { %1214 = vst [vmem:[#allocation5 + $0x10] sm:$0xf0] %v1206_v16  ;;  %1215 = vst [vmem:[#allocation5 + $0x18] sm:$0xf0] %v1207_v17  ;;  %v1320_v22 = vmul.f32 %v1312_v19, %v1280_v9  ;;  %v1321_v24 = vmul.f32 %v1313_v20, %v1284_v15  ;;  %v1390_v19 = vrot.slane %v1378_v8, %v2608_v23 }
 0x2b1   : > { %v1127_v25 = vpop.permute.xlu1 %1126 }
 0x2b2   : > { %v1328_v30 = vrot.slane %v1320_v22, 4  ;;  %v1329_v31 = vrot.slane %v1321_v24, 4  ;;  %v1309_v0 = vpop.permute.xlu0 %1308 }
 0x2b3   : > { %v1314_v32 = vsel %vm597_vm3, %v1307_v63, %v1309_v0  ;;  %v1315_v33 = vsel %vm597_vm3, %v1309_v0, %v1311_v2  ;;  %v1224_v63 = vrot.slane %v1216_v49, %v2606_v21 }
 0x2b4   : > { %1336 = vst [vmem:[#allocation5 + $0x20] sm:$0xf0] %v1328_v30  ;;  %1337 = vst [vmem:[#allocation5 + $0x28] sm:$0xf0] %v1329_v31  ;;  %v1322_v34 = vmul.f32 %v1314_v32, %v1288_v10  ;;  %v1323_v35 = vmul.f32 %v1315_v33, %v1292_v27  ;;  %v1398_v30 = vrot.slane %v1378_v8, %v2612_v28 }
 0x2b5   : > { %v1131_v36 = vpop.permute.xlu1 %1130  ;;  %v1502_v31 = vld [vmem:[#allocation11 + $0x7] ss:$8 sm:$0xf] }
 0x2b6   : > { %v1330_v39 = vrot.slane %v1322_v34, 4  ;;  %v1331_v40 = vrot.slane %v1323_v35, 4  ;;  %v1125_v41 = vpop.permute.xlu0 %1124 }
 0x2b7   : > { %v1132_v42 = vsel %vm417_vm0, %v1123_v60, %v1125_v41  ;;  %v1133_v43 = vsel %vm417_vm0, %v1125_v41, %v1127_v25  ;;  %v1228_v60 = vrot.slane %v1216_v49, %v2608_v23 }
 0x2b8   : > { %1338 = vst [vmem:[#allocation5 + $0x30] sm:$0xf0] %v1330_v39  ;;  %1339 = vst [vmem:[#allocation5 + $0x38] sm:$0xf0] %v1331_v40  ;;  %v1140_v44 = vmul.f32 %v1132_v42, %v1100_v37  ;;  %v1141_v45 = vmul.f32 %v1133_v43, %v1104_v38  ;;  %v1510_v38 = vrot.slane %v1502_v31, %v2606_v21 }
 0x2b9   : > { %v1251_v46 = vpop.permute.xlu1 %1250  ;;  %v1514_v39 = vrot.slane %v1502_v31, %v2608_v23 }
 0x2ba   : > { %1144 = vst [vmem:[#allocation5] sm:$0xf] %v1140_v44  ;;  %1145 = vst [vmem:[#allocation5 + $0x8] sm:$0xf] %v1141_v45  ;;  %v1129_v50 = vpop.permute.xlu0 %1128 }
 0x2bb   : > { %v1134_v51 = vsel %vm417_vm0, %v1127_v25, %v1129_v50  ;;  %v1135_v52 = vsel %vm417_vm0, %v1129_v50, %v1131_v36 }
 0x2bc   : > { %v1142_v53 = vmul.f32 %v1134_v51, %v1108_v47  ;;  %v1143_v54 = vmul.f32 %v1135_v52, %v1112_v48 }
 0x2bd   : > { %v1255_v55 = vpop.permute.xlu1 %1254 }
 0x2be   : > { %1146 = vst [vmem:[#allocation5 + $0x10] sm:$0xf] %v1142_v53  ;;  %1147 = vst [vmem:[#allocation5 + $0x18] sm:$0xf] %v1143_v54  ;;  %v1249_v61 = vpop.permute.xlu0 %1248  ;;  %v1518_v53 = vrot.slane %v1502_v31, %v2610_v26  ;;  %v1522_v54 = vrot.slane %v1502_v31, %v2612_v28 }
 0x2bf   : > { %v1257_v2 = vsel %vm537_vm2, %v1249_v61, %v1251_v46 }
 0x2c0   : > { %v1265_v3 = vmul.f32 %v1257_v2, %v1228_v60  ;;  %v1156_v2 = vrot.slane %v2756_v12, %v2606_v21 }
 0x2c1   : > { %v1247_v4 = vpop.permute.xlu1 %1246 }
 0x2c2   : > { %v1256_v7 = vsel %vm537_vm2, %v1247_v4, %v1249_v61  ;;  %1269 = vst [vmem:[#allocation5 + $0x28] sm:$0xf] %v1265_v3  ;;  %v1253_v14 = vpop.permute.xlu0 %1252  ;;  %v1160_v3 = vrot.slane %v2756_v12, %v2608_v23 }
 0x2c3   : > { %v1264_v13 = vmul.f32 %v1256_v7, %v1224_v63  ;;  %v1258_v11 = vsel %vm537_vm2, %v1251_v46, %v1253_v14  ;;  %v1259_v9 = vsel %vm537_vm2, %v1253_v14, %v1255_v55  ;;  %v1446_v55 = vld [vmem:[#allocation11 + $0x6] ss:$8 sm:$0xf] }
 0x2c4   : > { %v1266_v15 = vmul.f32 %v1258_v11, %v1232_v5  ;;  %v1267_v16 = vmul.f32 %v1259_v9, %v1236_v6  ;;  %v1458_v14 = vrot.slane %v1446_v55, %v2608_v23 }
 0x2c5   : > { %1268 = vst [vmem:[#allocation5 + $0x20] sm:$0xf] %v1264_v13  ;;  %v1413_v17 = vpop.permute.xlu1 %1412  ;;  %v1630_v40 = vld [vmem:[#allocation5 + $0x18] sm:$0xff]  ;;  %v1629_v42 = vld [vmem:[#allocation5 + $0x10] sm:$0xff]  ;;  %v1454_v13 = vrot.slane %v1446_v55, %v2606_v21 }
 0x2c6   : > { %1270 = vst [vmem:[#allocation5 + $0x30] sm:$0xf] %v1266_v15  ;;  %1271 = vst [vmem:[#allocation5 + $0x38] sm:$0xf] %v1267_v16  ;;  %v1411_v20 = vpop.permute.xlu0 %1410 }
 0x2c7   : > { %v1418_v22 = vsel %vm692_vm4, %v2754_v62, %v1411_v20  ;;  %v1419_v24 = vsel %vm692_vm4, %v1411_v20, %v1413_v17  ;;  %v1462_v20 = vrot.slane %v1446_v55, %v2610_v26 }
 0x2c8   : > { %v1426_v25 = vmul.f32 %v1418_v22, %v1386_v18  ;;  %v1427_v10 = vmul.f32 %v1419_v24, %v1390_v19  ;;  %v1466_v22 = vrot.slane %v1446_v55, %v2612_v28 }
 0x2c9   : > { %v1537_v27 = vpop.permute.xlu1 %1536 }
 0x2ca   : > { %v1434_v0 = vrot.slane %v1426_v25, 4  ;;  %v1435_v32 = vrot.slane %v1427_v10, 4  ;;  %v1415_v33 = vpop.permute.xlu0 %1414 }
 0x2cb   : > { %v1420_v34 = vsel %vm692_vm4, %v1413_v17, %v1415_v33  ;;  %v1421_v35 = vsel %vm692_vm4, %v1415_v33, %v2746_v56 }
 0x2cc   : > { %1442 = vst [vmem:[#allocation5 + $0x40] sm:$0xf0] %v1434_v0  ;;  %1443 = vst [vmem:[#allocation5 + $0x48] sm:$0xf0] %v1435_v32  ;;  %v1428_v62 = vmul.f32 %v1420_v34, %v1394_v29  ;;  %v1429_v36 = vmul.f32 %v1421_v35, %v1398_v30 }
 0x2cd   : > { %v1533_v37 = vpop.permute.xlu1 %1532  ;;  %v1634_v41 = vld [vmem:[#allocation5 + $0x38] sm:$0xff]  ;;  %v1633_v43 = vld [vmem:[#allocation5 + $0x30] sm:$0xff] }
 0x2ce   : > { %v1436_v44 = vrot.slane %v1428_v62, 4  ;;  %v1437_v45 = vrot.slane %v1429_v36, 4  ;;  %v1535_v46 = vpop.permute.xlu0 %1534  ;;  %v2014_v47 = vpack.c.bf16 %v1634_v41, %v1630_v40  ;;  %v2016_v48 = vpack.c.bf16 %v1633_v43, %v1629_v42  ;;  %v1631_v40 = vld [vmem:[#allocation5 + $0x20] sm:$0xff] }
 0x2cf   : > { %v1542_v56 = vsel %vm812_vm6, %v1533_v37, %v1535_v46  ;;  %v1543_v49 = vsel %vm812_vm6, %v1535_v46, %v1537_v27 }
 0x2d0   : > { %1444 = vst [vmem:[#allocation5 + $0x50] sm:$0xf0] %v1436_v44  ;;  %1445 = vst [vmem:[#allocation5 + $0x58] sm:$0xf0] %v1437_v45  ;;  %v1550_v50 = vmul.f32 %v1542_v56, %v1510_v38  ;;  %v1551_v51 = vmul.f32 %v1543_v49, %v1514_v39  ;;  %2015 = vmatprep.subr.bf16.mxu1 %v2014_v47  ;;  %v1632_v39 = vld [vmem:[#allocation5 + $0x28] sm:$0xff] }
 0x2d1   : > { %v1481_v52 = vpop.permute.xlu1 %1480  ;;  %2017 = vmatpush1.bf16.msra.mxu1 %v2016_v48 }
 0x2d2   : > { %v1558_v60 = vrot.slane %v1550_v50, 4  ;;  %v1559_v61 = vrot.slane %v1551_v51, 4  ;;  %v1539_v63 = vpop.permute.xlu0 %1538 }
 0x2d3   : > { %v1544_v4 = vsel %vm812_vm6, %v1537_v27, %v1539_v63  ;;  %v1545_v5 = vsel %vm812_vm6, %v1539_v63, %v2748_v57  ;;  %v1570_v27 = vld [vmem:[#allocation11 + $0x20] ss:$8 sm:$0xf] }
 0x2d4   : > { %1566 = vst [vmem:[#allocation5 + $0x60] sm:$0xf0] %v1558_v60  ;;  %1567 = vst [vmem:[#allocation5 + $0x68] sm:$0xf0] %v1559_v61  ;;  %v1552_v6 = vmul.f32 %v1544_v4, %v1518_v53  ;;  %v1553_v7 = vmul.f32 %v1545_v5, %v1522_v54  ;;  %v1582_v33 = vrot.slane %v1570_v27, %v2608_v23  ;;  %v1636_v41 = vld [vmem:[#allocation5 + $0x48] sm:$0xff]  ;;  %v1635_v61 = vld [vmem:[#allocation5 + $0x40] sm:$0xff] }
 0x2d5   : > { %v1181_v8 = vpop.permute.xlu1 %1180  ;;  %v1586_v35 = vrot.slane %v1570_v27, %v2610_v26  ;;  %v1590_v38 = vrot.slane %v1570_v27, %v2612_v28  ;;  %v1578_v43 = vrot.slane %v1570_v27, %v2606_v21 }
 0x2d6   : > { %v1188_v11 = vsel %vm477_vm1, %v2750_v58, %v1181_v8  ;;  %v1189_v12 = vsel %vm477_vm1, %v1181_v8, %v2752_v59  ;;  %v1560_v9 = vrot.slane %v1552_v6, 4  ;;  %v1561_v15 = vrot.slane %v1553_v7, 4  ;;  %v1479_v57 = vpop.permute.xlu0 %1478  ;;  %v1626_v6 = vld [vmem:[%s2891_s4] sm:$0xf] }
 0x2d7   : > { %v1196_v16 = vmul.f32 %v1188_v11, %v1156_v2  ;;  %v1197_v17 = vmul.f32 %v1189_v12, %v1160_v3  ;;  %v1486_v18 = vsel %vm752_vm5, %v2758_v1, %v1479_v57  ;;  %v1487_v19 = vsel %vm752_vm5, %v1479_v57, %v1481_v52  ;;  %v1637_v54 = vld [vmem:[#allocation5 + $0x50] sm:$0xff] }
 0x2d8   : > { %1568 = vst [vmem:[#allocation5 + $0x70] sm:$0xf0] %v1560_v9  ;;  %1569 = vst [vmem:[#allocation5 + $0x78] sm:$0xf0] %v1561_v15  ;;  %v1494_v25 = vmul.f32 %v1486_v18, %v1454_v13  ;;  %v1495_v59 = vmul.f32 %v1487_v19, %v1458_v14 }
 0x2d9   : > { %v1204_v58 = vrot.slane %v1196_v16, 4  ;;  %v1205_v24 = vrot.slane %v1197_v17, 4  ;;  %v1485_v10 = vpop.permute.xlu1 %1484 }
 0x2da   : > { %1498 = vst [vmem:[#allocation5 + $0x60] sm:$0xf] %v1494_v25  ;;  %1499 = vst [vmem:[#allocation5 + $0x68] sm:$0xf] %v1495_v59  ;;  %v1483_v29 = vpop.permute.xlu0 %1482 }
 0x2db   : > { %1212 = vst [vmem:[#allocation5] sm:$0xf0] %v1204_v58  ;;  %1213 = vst [vmem:[#allocation5 + $0x8] sm:$0xf0] %v1205_v24  ;;  %v1488_v1 = vsel %vm752_vm5, %v1481_v52, %v1483_v29  ;;  %v1489_v30 = vsel %vm752_vm5, %v1483_v29, %v1485_v10  ;;  %v1638_v52 = vld [vmem:[#allocation5 + $0x58] sm:$0xff] }
 0x2dc   : > { %v1496_v31 = vmul.f32 %v1488_v1, %v1462_v20  ;;  %v1497_v0 = vmul.f32 %v1489_v30, %v1466_v22 }
 0x2dd   : > { %v1603_v32 = vpop.permute.xlu1 %1602 }
 0x2de   : > { %1500 = vst [vmem:[#allocation5 + $0x70] sm:$0xf] %v1496_v31  ;;  %1501 = vst [vmem:[#allocation5 + $0x78] sm:$0xf] %v1497_v0  ;;  %v1605_v34 = vpop.permute.xlu0 %1604 }
 0x2df   : > { %v1611_v62 = vsel %vm872_vm7, %v1603_v32, %v1605_v34 }
 0x2e0   : > { %v1619_v36 = vmul.f32 %v1611_v62, %v1582_v33 }
 0x2e1   : > { %v1607_v37 = vpop.permute.xlu1 %1606  ;;  %v1640_v45 = vld [vmem:[#allocation5 + $0x68] sm:$0xff]  ;;  %v1639_v51 = vld [vmem:[#allocation5 + $0x60] sm:$0xff] }
 0x2e2   : > { %v1612_v42 = vsel %vm872_vm7, %v1605_v34, %v1607_v37  ;;  %v1628_v44 = vld [vmem:[#allocation5 + $0x8] sm:$0xff]  ;;  %v1627_v23 = vld [vmem:[#allocation5] sm:$0xff]  ;;  %1623 = vst [vmem:[#allocation5 + $0x88] sm:$0xf] %v1619_v36  ;;  %v1609_v47 = vpop.permute.xlu0 %1608  ;;  %v2010_v56 = vpack.c.bf16 %v1640_v45, %v1636_v41  ;;  %v2012_v3 = vpack.c.bf16 %v1639_v51, %v1635_v61 }
 0x2e3   : > { %v1620_v46 = vmul.f32 %v1612_v42, %v1586_v35  ;;  %v2006_v26 = vpack.c.bf16 %v1632_v39, %v1628_v44  ;;  %v2008_v48 = vpack.c.bf16 %v1631_v40, %v1627_v23  ;;  %v1613_v49 = vsel %vm872_vm7, %v1607_v37, %v1609_v47 }
 0x2e4   : > { %v1621_v28 = vmul.f32 %v1613_v49, %v1590_v38 }
 0x2e5   : > { %1624 = vst [vmem:[#allocation5 + $0x90] sm:$0xf] %v1620_v46  ;;  %v1601_v50 = vpop.permute.xlu1 %1600  ;;  %2007 = vmatprep.subr.bf16.mxu0 %v2006_v26  ;;  %v1642_v21 = vld [vmem:[#allocation5 + $0x78] sm:$0xff]  ;;  %v1641_v55 = vld [vmem:[#allocation5 + $0x70] sm:$0xff] }
 0x2e6   : > { %v1610_v53 = vsel %vm872_vm7, %v1601_v50, %v1603_v32  ;;  %2009 = vmatpush1.bf16.msra.mxu0 %v2008_v48  ;;  %1625 = vst [vmem:[#allocation5 + $0x98] sm:$0xf] %v1621_v28  ;;  %v2018_v63 = vpack.c.bf16 %v1642_v21, %v1638_v52  ;;  %v2020_v2 = vpack.c.bf16 %v1641_v55, %v1637_v54 }
 0x2e7   : > { %v1618_v60 = vmul.f32 %v1610_v53, %v1578_v43  ;;  %2011 = vmatprep.subr.bf16.mxu0 %v2010_v56 }
 0x2e8   : > { %2019 = vmatprep.subr.bf16.mxu1 %v2018_v63 }
 0x2e9   : > { %1622 = vst [vmem:[#allocation5 + $0x80] sm:$0xf] %v1618_v60  ;;  %2021 = vmatpush1.bf16.msra.mxu1 %v2020_v2  ;;  %v1644_v4 = vld [vmem:[#allocation5 + $0x88] sm:$0xf] }
 0x2ea   : > { %2013 = vmatpush1.bf16.msra.mxu0 %v2012_v3 }
 0x2eb   : > { %1960 = vmatprep.subr.msk.mxu0 %vm1657_vm9, %v1644_v4 }
 0x2ec   : > { %v1645_v7 = vld [vmem:[#allocation5 + $0x90] sm:$0xf] }
 0x2ed   : > { %v1646_v5 = vld [vmem:[#allocation5 + $0x98] sm:$0xf] }
 0x2ee   : > { %1963 = vmatprep.subr.msk.mxu1 %vm1657_vm9, %v1646_v5 }
 0x2ef   : > { %1964 = vmatpush1.msk.msra.mxu1 %vm1657_vm9, %v1645_v7 }
 0x2f0   : > { %v1643_v8 = vld [vmem:[#allocation5 + $0x80] sm:$0xf]  ;;  %1965 = vmatmul.mubr.msk.f32.vlgmr.msra.gmra.mrb[2].mxu1 %vm1653_vm10, %v1626_v6 }
 0x2f1   : > { %1961 = vmatpush1.msk.msra.mxu0 %vm1657_vm9, %v1643_v8 }
 0x2f2   : > { %1962 = vmatmul.mubr.msk.f32.vlgmr.msra.gmra.mrb[2].mxu0 %vm1653_vm10, %v1626_v6 }
 0x2f3   : > { %v1651_v13 = vpop.permute.xlu0 %1650 }
 0x3c3   : > { %v1807_v14 = vpop.f32.mrb[2].mxu1 }
 0x3c4   : > { %v1808_v12 = vadd.f32 %v1807_v14, %v1651_v13  ;;  %v1809_v9 = vpop.f32.mrb[3].mxu1 }
 0x3c5   : > { %v1736_v11 = vpop.f32.mrb[2].mxu0  ;;  %v1810_v17 = vadd.f32 %v1809_v9, %v1651_v13 }
 0x3c6   : > { %v1737_v15 = vadd.f32 %v1736_v11, %v1651_v13  ;;  %v1738_v16 = vpop.f32.mrb[3].mxu0  ;;  %v1814_v57 = vmax.f32 %v1808_v12, 0.0 }
 0x3c7   : > { %v1739_v18 = vadd.f32 %v1738_v16, %v1651_v13  ;;  %v1815_v20 = vmax.f32 %v1810_v17, 0.0 }
 0x3c8   : > { %v1812_v19 = vmax.f32 %v1737_v15, 0.0 }
 0x3c9   : > { %v1813_v22 = vmax.f32 %v1739_v18, 0.0  ;;  %v1821_v58 = vcombine.low %v1814_v57, %v1815_v20 }
 0x3cb   : > { %v1820_v24 = vcombine.low %v1812_v19, %v1813_v22  ;;  %1825 = vst [vmem:[%s346_s16 + $0x8] sm:$0xff] %v1821_v58 }
 0x3cd   : > { %1824 = vst [vmem:[%s346_s16] sm:$0xff] %v1820_v24 }
 0x3ce   : > { %2206 = shalt.err (!%p2203_p1)
}
 0x3cf   : > { %s2207_s13 = scalar_lea.hbm %s2843_s21, 256  ;;  %s2211_s23 = scalar_lea.hbm %s2894_s7, 512 }
 0x3d0   : > { %p2208_p6 = scmp.ne.s32.totalorder %s2843_s21, %s2207_s13  ;;  %p2212_p12 = scmp.lt.u32.totalorder %s2843_s21, %s2894_s7 }
 0x3d1   : > { %p2213_p11 = scmp.lt.u32.totalorder %s2211_s23, %s2207_s13  ;;  %p2215_p10 = scmp.lt.u32.totalorder %s2207_s13, %s2843_s21 }
 0x3d2   : > { %p2209_p8 = pnand %p2208_p6, %p2918_p13 }
 0x3d3   : > { %p2214_p0 = por %p2213_p11, %p2212_p12 }
 0x3d4   : > { %p2210_p4 = pneg %p2209_p8 }
 0x3d5   : > { %p2216_p3 = por %p2215_p10, %p2214_p0 }
 0x3d7   : > { %p2217_p7 = pnand %p2216_p3, %p2210_p4 }
 0x3d9   : > { %2220 = shalt.err (!%p2217_p7)
}
 0x3da   : > { %2030 = dma.vmem_to_hbm [thread:$0]  (%p2918_p13), %s2845_s30, 256, %s2843_s21, %s1827_s26  }
 0x3db PF: > { %s1853_s29 = sand.u32 1, %s2255_s24   ;;  %p2919_p9 = scmp.ne.s32.totalorder %s2905_s8, 0 }
 0x3dc   : > { %p2920_p2 = scmp.ge.s32.totalorder %s2267_s27, 2  ;;  %s1854_s17 = scalar_lea.sflag [#allocation8], %s1853_s29 }
 0x3de   : > { %p2044_p5 = pnand %p2920_p2, %p2919_p9 }
 0x3e0   : > { %2250 = dma.done.wait (!%p2044_p5), %s1854_s17, 256  }
 0x3e1   : > { %2252 = vsyncadd (!%p2044_p5), %s1854_s17, 4294967040  ;;  %s2921_s27 = sld [smem:[#allocation18_spill]]  ;;  %s2922_s10 = sld [smem:[#allocation17_spill]] }
 0x3e2   : > { %s2923_s26 = sld [smem:[#allocation19_spill]]  ;;  %s2924_s24 = smov %s2259_s25 }
 0x3e7   : > { %p23_p1 = scmp.ge.s32.totalorder %s2921_s27, 4   ;;  %s2925_s25 = smov %s2922_s10 }
 0x3e9   :  { %25 = sbr.rel (!%p23_p1) target bundleno = 9 (0x9), region = 118 }
 0x3f0   :  { %1859 = vsyncpa [#allocation7], 1 }
 0x3f1   :  { %1861 = vsyncpa [#allocation7 + $0x1], 1 }
 0x3f2   :  { %1862 = vsyncpa [#allocation10], 1 }
 0x3f3   :  { %1864 = vsyncpa [#allocation10 + $0x1], 1 }
 0x3f4   :  { %1865 = vsyncpa [#allocation8], 1 }
 0x3f5   :  { %1867 = vsyncpa [#allocation8 + $0x1], 1 }

</bundles_post_ra>
